<compile_context>
chip_gen: v7x
topology: tpu7x:2x2x1
jax: 0.10.0
libtpu: 0.0.40
codegen_flags: <defaults>
</compile_context>

<pallas_src>
import jax
import jax.numpy as jnp
import numpy as np
from jax import lax
from jax.experimental import pallas as pl
from jax.experimental.pallas import tpu as pltpu


def lstm_kernel(x_ref, wih_ref, whh_ref, b_ref, wfc_ref, bfc_ref, out_ref, gx_ref):
    # x_ref:   (T*Bp, I)   f32, time-major flattened
    # wih_ref: (I, 4Hp)    f32   whh_ref: (Hp, 4Hp) bf16
    # b_ref:   (1, 4Hp)    f32 (= b_ih + b_hh, gate order [i,f,o,g], lane-padded)
    # wfc_ref: (1, Hp)     f32   bfc_ref: (1, 1) f32
    # out_ref: (Bp, 1)     f32
    # gx_ref:  (T*Bp, 4Hp) f32 VMEM scratch (hoisted input projection)
    Bp = out_ref.shape[0]
    Hp = whh_ref.shape[0]
    T = x_ref.shape[0] // Bp

    # ---- hoisted input projection: one matmul, bias folded in, f32 ---------------
    gx_ref[...] = (
        jnp.dot(x_ref[...], wih_ref[...], preferred_element_type=jnp.float32)
        + b_ref[...]
    )

    def sigmoid_t(z):
        # exact identity: sigmoid(z) = 0.5*tanh(0.5*z) + 0.5  (1 EUP op + VPU fma)
        return 0.5 * jnp.tanh(0.5 * z) + 0.5

    def activate(gates):
        # gate order [i, f, o, g]: one wide sigmoid over 3*Hp lanes, one tanh.
        s = sigmoid_t(gates[:, 0:3 * Hp])
        g_g = jnp.tanh(gates[:, 3 * Hp:4 * Hp])
        return s[:, 0:Hp], s[:, Hp:2 * Hp], s[:, 2 * Hp:3 * Hp], g_g

    # ---- step 0: h0 = c0 = 0 -> recurrent matmul and f*c term vanish -------------
    i_g, f_g, o_g, g_g = activate(gx_ref[0:Bp, :])
    c = i_g * g_g                                   # f32
    h_b = (o_g * jnp.tanh(c)).astype(jnp.bfloat16)  # bf16 matmul operand

    # ---- recurrence: fori_loop(unroll=True) bounds live ranges ---------------------
    def body(t, carry):
        c, h_b = carry
        off = pl.multiple_of(t * Bp, Bp)            # sublane-aligned dynamic slice
        gates = gx_ref[pl.ds(off, Bp), :] + jnp.dot(
            h_b, whh_ref[...], preferred_element_type=jnp.float32
        )  # whh re-read from VMEM each step (cheap vld) -> no 32-vreg residency
        i_g, f_g, o_g, g_g = activate(gates)
        c = f_g * c + i_g * g_g
        h_b = (o_g * jnp.tanh(c)).astype(jnp.bfloat16)
        return c, h_b

    c, h_b = lax.fori_loop(1, T, body, (c, h_b), unroll=True)

    # ---- head: Dropout -> identity at inference; FC(H,1) as a lane reduction -------
    h = h_b.astype(jnp.float32)
    logits = jnp.sum(h * wfc_ref[...], axis=-1, keepdims=True) + bfc_ref[...]
    out_ref[...] = jax.nn.sigmoid(logits)


def _pad_to(a, size, axis):
    pad = size - a.shape[axis]
    if pad == 0:
        return a
    widths = [(0, 0)] * a.ndim
    widths[axis] = (0, pad)
    return jnp.pad(a, widths)


def lstm_model_forward(x, params):
    """x: (B, T, I) float32 -> (B, 1) float32."""
    B, T, I = x.shape
    H = params["w_hh"].shape[1]
    Hp = ((H + 127) // 128) * 128   # lane-aligned hidden width
    Bp = ((B + 7) // 8) * 8         # sublane-aligned batch

    # PyTorch gate order [i, f, g, o] -> kernel order [i, f, o, g] (contiguous sigmoid slab)
    gate_order = jnp.array((0, 1, 3, 2))

    def pad_gates_out(w):           # w: (4H, K) -> (K, 4*Hp)
        wg = w.reshape(4, H, -1)[gate_order, :, :]   # reorder gates (weight prep, free)
        wg = jnp.transpose(wg, (2, 0, 1))            # (K_in, 4, H_out)
        wg = _pad_to(wg, Hp, axis=2)                 # (K_in, 4, Hp)
        return wg.reshape(w.shape[1], 4 * Hp)

    wih_p = pad_gates_out(params["w_ih"]).astype(jnp.float32)                        # (I, 4Hp)
    whh_p = _pad_to(pad_gates_out(params["w_hh"]), Hp, axis=0).astype(jnp.bfloat16)  # (Hp, 4Hp)
    b = (params["b_ih"] + params["b_hh"]).reshape(4, H)[gate_order, :]
    b_p = _pad_to(b, Hp, axis=1).reshape(1, 4 * Hp).astype(jnp.float32)              # (1, 4Hp)
    wfc_p = _pad_to(params["w_fc"], Hp, axis=1).astype(jnp.float32)                  # (1, Hp)
    bfc = params["b_fc"].reshape(1, 1).astype(jnp.float32)

    # input prep: zero-pad batch, time-major flatten, f32 (projection is off critical path)
    x_p = _pad_to(x, Bp, axis=0)                                        # (Bp, T, I)
    x2d = jnp.transpose(x_p, (1, 0, 2)).reshape(T * Bp, I).astype(jnp.float32)

    out = pl.pallas_call(
        lstm_kernel,
        out_shape=jax.ShapeDtypeStruct((Bp, 1), jnp.float32),
        # No grid: total footprint (<1 MiB) fits VMEM on v5e/v6e/v7x alike.
        in_specs=[pl.BlockSpec(memory_space=pltpu.VMEM)] * 6,
        out_specs=pl.BlockSpec(memory_space=pltpu.VMEM),
        scratch_shapes=[pltpu.VMEM((T * Bp, 4 * Hp), jnp.float32)],
    )(x2d, wih_p, whh_p, b_p, wfc_p, bfc)
    return out[:B]


def init_params(key, input_size, hidden_size):
    """Deterministic init mimicking PyTorch's U(-1/sqrt(H), 1/sqrt(H))."""
    k = 1.0 / np.sqrt(hidden_size)
    keys = jax.random.split(key, 6)
    u = lambda kk, shape: jax.random.uniform(kk, shape, jnp.float32, -k, k)
    return {
        "w_ih": u(keys[0], (4 * hidden_size, input_size)),
        "w_hh": u(keys[1], (4 * hidden_size, hidden_size)),
        "b_ih": u(keys[2], (4 * hidden_size,)),
        "b_hh": u(keys[3], (4 * hidden_size,)),
        "w_fc": u(keys[4], (1, hidden_size)),
        "b_fc": u(keys[5], (1,)),
    }


def reference_forward(x, params):
    """Pure-JAX f32 reference matching nn.LSTM + Linear + sigmoid (eval mode)."""
    B, T, I = x.shape
    H = params["w_hh"].shape[1]
    h = jnp.zeros((B, H), jnp.float32)
    c = jnp.zeros((B, H), jnp.float32)
    for t in range(T):
        gates = (x[:, t, :] @ params["w_ih"].T + params["b_ih"]
                 + h @ params["w_hh"].T + params["b_hh"])
        i_g = jax.nn.sigmoid(gates[:, 0:H])
        f_g = jax.nn.sigmoid(gates[:, H:2 * H])
        g_g = jnp.tanh(gates[:, 2 * H:3 * H])
        o_g = jax.nn.sigmoid(gates[:, 3 * H:4 * H])
        c = f_g * c + i_g * g_g
        h = o_g * jnp.tanh(c)
    logits = h @ params["w_fc"].T + params["b_fc"]
    return jax.nn.sigmoid(logits)


if __name__ == "__main__":
    batch, seq_len, input_size, hidden_size = 2, 8, 4, 50  # hidden_size=50 per spec

    key = jax.random.PRNGKey(0)
    k_x, k_p = jax.random.split(key)
    x = jax.random.normal(k_x, (batch, seq_len, input_size), jnp.float32)
    params = init_params(k_p, input_size, hidden_size)

    out = lstm_model_forward(x, params)
    out = jax.block_until_ready(out)

    ref = reference_forward(x, params)
    # bf16 recurrent matmul / bf16 h carry with f32 accumulation -> loosened tolerance.
    np.testing.assert_allclose(np.asarray(out), np.asarray(ref),
                               rtol=1e-2, atol=1e-2)
    assert out.shape == (batch, 1)
    print("KERNEL_OK")
</pallas_src>

<mosaic_0001>
module attributes {stable_mosaic.version = 11 : i64} {
  func.func @lstm_kernel(%arg0: memref<64x4xf32, #tpu.memory_space<vmem>>, %arg1: memref<4x512xf32, #tpu.memory_space<vmem>>, %arg2: memref<128x512xbf16, #tpu.memory_space<vmem>>, %arg3: memref<1x512xf32, #tpu.memory_space<vmem>>, %arg4: memref<1x128xf32, #tpu.memory_space<vmem>>, %arg5: memref<1x1xf32, #tpu.memory_space<vmem>>, %arg6: memref<8x1xf32, #tpu.memory_space<vmem>>, %arg7: memref<64x512xf32, #tpu.memory_space<vmem>>) attributes {dimension_semantics = [], scalar_prefetch = 0 : i64, scratch_operands = 1 : i64, tpu.core_type = #tpu.core_type<tc>} {
    %c0 = arith.constant 0 : index
    %c0_0 = arith.constant 0 : index
    %0 = vector.load %arg0[%c0, %c0_0] : memref<64x4xf32, #tpu.memory_space<vmem>>, vector<64x4xf32>
    %c0_1 = arith.constant 0 : index
    %c0_2 = arith.constant 0 : index
    %1 = vector.load %arg1[%c0_1, %c0_2] : memref<4x512xf32, #tpu.memory_space<vmem>>, vector<4x512xf32>
    %cst = arith.constant dense<0.000000e+00> : vector<64x512xf32>
    %2 = tpu.matmul %0, %1, %cst {dimension_numbers = #tpu.dot_dimension_numbers<[1], [0], [0], [1], [0, 0, 1, 1], [], []>} : vector<64x4xf32>, vector<4x512xf32>, vector<64x512xf32> -> vector<64x512xf32>
    %c0_3 = arith.constant 0 : index
    %c0_4 = arith.constant 0 : index
    %3 = vector.load %arg3[%c0_3, %c0_4] : memref<1x512xf32, #tpu.memory_space<vmem>>, vector<1x512xf32>
    %4 = vector.broadcast %3 : vector<1x512xf32> to vector<64x512xf32>
    %5 = arith.addf %2, %4 : vector<64x512xf32>
    %c0_5 = arith.constant 0 : index
    %c0_6 = arith.constant 0 : index
    %6 = vector.load %arg7[%c0_5, %c0_6] : memref<64x512xf32, #tpu.memory_space<vmem>>, vector<64x512xf32>
    tpu.vector_store %arg7[%c0_5, %c0_6], %5 {strides = array<i32>} : memref<64x512xf32, #tpu.memory_space<vmem>>, vector<64x512xf32>,
    %c0_7 = arith.constant 0 : index
    %c0_8 = arith.constant 0 : index
    %7 = vector.load %arg7[%c0_7, %c0_8] : memref<64x512xf32, #tpu.memory_space<vmem>>, vector<8x512xf32>
    %8 = vector.extract_strided_slice %7 {offsets = [0, 0], sizes = [8, 384], strides = [1, 1]} : vector<8x512xf32> to vector<8x384xf32>
    %cst_9 = arith.constant 5.000000e-01 : f32
    %9 = vector.broadcast %cst_9 : f32 to vector<8x384xf32>
    %10 = arith.mulf %9, %8 : vector<8x384xf32>
    %11 = math.tanh %10 : vector<8x384xf32>
    %cst_10 = arith.constant 5.000000e-01 : f32
    %12 = vector.broadcast %cst_10 : f32 to vector<8x384xf32>
    %13 = arith.mulf %12, %11 : vector<8x384xf32>
    %cst_11 = arith.constant 5.000000e-01 : f32
    %14 = vector.broadcast %cst_11 : f32 to vector<8x384xf32>
    %15 = arith.addf %13, %14 : vector<8x384xf32>
    %16 = vector.extract_strided_slice %7 {offsets = [0, 384], sizes = [8, 128], strides = [1, 1]} : vector<8x512xf32> to vector<8x128xf32>
    %17 = math.tanh %16 : vector<8x128xf32>
    %18 = vector.extract_strided_slice %15 {offsets = [0, 0], sizes = [8, 128], strides = [1, 1]} : vector<8x384xf32> to vector<8x128xf32>
    %19 = vector.extract_strided_slice %15 {offsets = [0, 256], sizes = [8, 128], strides = [1, 1]} : vector<8x384xf32> to vector<8x128xf32>
    %20 = arith.mulf %18, %17 : vector<8x128xf32>
    %21 = math.tanh %20 : vector<8x128xf32>
    %22 = arith.mulf %19, %21 : vector<8x128xf32>
    %23 = arith.truncf %22 : vector<8x128xf32> to vector<8x128xbf16>
    %c1_i32 = arith.constant 1 : i32
    %c8_i32 = arith.constant 8 : i32
    %24 = arith.muli %c1_i32, %c8_i32 : i32
    %25 = tpu.assume_multiple %24, 8 : i32
    %26 = arith.index_cast %25 : i32 to index
    %c0_12 = arith.constant 0 : index
    %27 = vector.load %arg7[%26, %c0_12] : memref<64x512xf32, #tpu.memory_space<vmem>>, vector<8x512xf32>
    %c0_13 = arith.constant 0 : index
    %c0_14 = arith.constant 0 : index
    %28 = vector.load %arg2[%c0_13, %c0_14] : memref<128x512xbf16, #tpu.memory_space<vmem>>, vector<128x512xbf16>
    %cst_15 = arith.constant dense<0.000000e+00> : vector<8x512xf32>
    %29 = tpu.matmul %23, %28, %cst_15 {dimension_numbers = #tpu.dot_dimension_numbers<[1], [0], [0], [1], [0, 0, 1, 1], [], []>} : vector<8x128xbf16>, vector<128x512xbf16>, vector<8x512xf32> -> vector<8x512xf32>
    %30 = arith.addf %27, %29 : vector<8x512xf32>
    %31 = vector.extract_strided_slice %30 {offsets = [0, 0], sizes = [8, 384], strides = [1, 1]} : vector<8x512xf32> to vector<8x384xf32>
    %cst_16 = arith.constant 5.000000e-01 : f32
    %32 = vector.broadcast %cst_16 : f32 to vector<8x384xf32>
    %33 = arith.mulf %32, %31 : vector<8x384xf32>
    %34 = math.tanh %33 : vector<8x384xf32>
    %cst_17 = arith.constant 5.000000e-01 : f32
    %35 = vector.broadcast %cst_17 : f32 to vector<8x384xf32>
    %36 = arith.mulf %35, %34 : vector<8x384xf32>
    %cst_18 = arith.constant 5.000000e-01 : f32
    %37 = vector.broadcast %cst_18 : f32 to vector<8x384xf32>
    %38 = arith.addf %36, %37 : vector<8x384xf32>
    %39 = vector.extract_strided_slice %30 {offsets = [0, 384], sizes = [8, 128], strides = [1, 1]} : vector<8x512xf32> to vector<8x128xf32>
    %40 = math.tanh %39 : vector<8x128xf32>
    %41 = vector.extract_strided_slice %38 {offsets = [0, 0], sizes = [8, 128], strides = [1, 1]} : vector<8x384xf32> to vector<8x128xf32>
    %42 = vector.extract_strided_slice %38 {offsets = [0, 128], sizes = [8, 128], strides = [1, 1]} : vector<8x384xf32> to vector<8x128xf32>
    %43 = vector.extract_strided_slice %38 {offsets = [0, 256], sizes = [8, 128], strides = [1, 1]} : vector<8x384xf32> to vector<8x128xf32>
    %44 = arith.mulf %42, %20 : vector<8x128xf32>
    %45 = arith.mulf %41, %40 : vector<8x128xf32>
    %46 = arith.addf %44, %45 : vector<8x128xf32>
    %47 = math.tanh %46 : vector<8x128xf32>
    %48 = arith.mulf %43, %47 : vector<8x128xf32>
    %49 = arith.truncf %48 : vector<8x128xf32> to vector<8x128xbf16>
    %c2_i32 = arith.constant 2 : i32
    %c8_i32_19 = arith.constant 8 : i32
    %50 = arith.muli %c2_i32, %c8_i32_19 : i32
    %51 = tpu.assume_multiple %50, 8 : i32
    %52 = arith.index_cast %51 : i32 to index
    %c0_20 = arith.constant 0 : index
    %53 = vector.load %arg7[%52, %c0_20] : memref<64x512xf32, #tpu.memory_space<vmem>>, vector<8x512xf32>
    %c0_21 = arith.constant 0 : index
    %c0_22 = arith.constant 0 : index
    %54 = vector.load %arg2[%c0_21, %c0_22] : memref<128x512xbf16, #tpu.memory_space<vmem>>, vector<128x512xbf16>
    %cst_23 = arith.constant dense<0.000000e+00> : vector<8x512xf32>
    %55 = tpu.matmul %49, %54, %cst_23 {dimension_numbers = #tpu.dot_dimension_numbers<[1], [0], [0], [1], [0, 0, 1, 1], [], []>} : vector<8x128xbf16>, vector<128x512xbf16>, vector<8x512xf32> -> vector<8x512xf32>
    %56 = arith.addf %53, %55 : vector<8x512xf32>
    %57 = vector.extract_strided_slice %56 {offsets = [0, 0], sizes = [8, 384], strides = [1, 1]} : vector<8x512xf32> to vector<8x384xf32>
    %cst_24 = arith.constant 5.000000e-01 : f32
    %58 = vector.broadcast %cst_24 : f32 to vector<8x384xf32>
    %59 = arith.mulf %58, %57 : vector<8x384xf32>
    %60 = math.tanh %59 : vector<8x384xf32>
    %cst_25 = arith.constant 5.000000e-01 : f32
    %61 = vector.broadcast %cst_25 : f32 to vector<8x384xf32>
    %62 = arith.mulf %61, %60 : vector<8x384xf32>
    %cst_26 = arith.constant 5.000000e-01 : f32
    %63 = vector.broadcast %cst_26 : f32 to vector<8x384xf32>
    %64 = arith.addf %62, %63 : vector<8x384xf32>
    %65 = vector.extract_strided_slice %56 {offsets = [0, 384], sizes = [8, 128], strides = [1, 1]} : vector<8x512xf32> to vector<8x128xf32>
    %66 = math.tanh %65 : vector<8x128xf32>
    %67 = vector.extract_strided_slice %64 {offsets = [0, 0], sizes = [8, 128], strides = [1, 1]} : vector<8x384xf32> to vector<8x128xf32>
    %68 = vector.extract_strided_slice %64 {offsets = [0, 128], sizes = [8, 128], strides = [1, 1]} : vector<8x384xf32> to vector<8x128xf32>
    %69 = vector.extract_strided_slice %64 {offsets = [0, 256], sizes = [8, 128], strides = [1, 1]} : vector<8x384xf32> to vector<8x128xf32>
    %70 = arith.mulf %68, %46 : vector<8x128xf32>
    %71 = arith.mulf %67, %66 : vector<8x128xf32>
    %72 = arith.addf %70, %71 : vector<8x128xf32>
    %73 = math.tanh %72 : vector<8x128xf32>
    %74 = arith.mulf %69, %73 : vector<8x128xf32>
    %75 = arith.truncf %74 : vector<8x128xf32> to vector<8x128xbf16>
    %c3_i32 = arith.constant 3 : i32
    %c8_i32_27 = arith.constant 8 : i32
    %76 = arith.muli %c3_i32, %c8_i32_27 : i32
    %77 = tpu.assume_multiple %76, 8 : i32
    %78 = arith.index_cast %77 : i32 to index
    %c0_28 = arith.constant 0 : index
    %79 = vector.load %arg7[%78, %c0_28] : memref<64x512xf32, #tpu.memory_space<vmem>>, vector<8x512xf32>
    %c0_29 = arith.constant 0 : index
    %c0_30 = arith.constant 0 : index
    %80 = vector.load %arg2[%c0_29, %c0_30] : memref<128x512xbf16, #tpu.memory_space<vmem>>, vector<128x512xbf16>
    %cst_31 = arith.constant dense<0.000000e+00> : vector<8x512xf32>
    %81 = tpu.matmul %75, %80, %cst_31 {dimension_numbers = #tpu.dot_dimension_numbers<[1], [0], [0], [1], [0, 0, 1, 1], [], []>} : vector<8x128xbf16>, vector<128x512xbf16>, vector<8x512xf32> -> vector<8x512xf32>
    %82 = arith.addf %79, %81 : vector<8x512xf32>
    %83 = vector.extract_strided_slice %82 {offsets = [0, 0], sizes = [8, 384], strides = [1, 1]} : vector<8x512xf32> to vector<8x384xf32>
    %cst_32 = arith.constant 5.000000e-01 : f32
    %84 = vector.broadcast %cst_32 : f32 to vector<8x384xf32>
    %85 = arith.mulf %84, %83 : vector<8x384xf32>
    %86 = math.tanh %85 : vector<8x384xf32>
    %cst_33 = arith.constant 5.000000e-01 : f32
    %87 = vector.broadcast %cst_33 : f32 to vector<8x384xf32>
    %88 = arith.mulf %87, %86 : vector<8x384xf32>
    %cst_34 = arith.constant 5.000000e-01 : f32
    %89 = vector.broadcast %cst_34 : f32 to vector<8x384xf32>
    %90 = arith.addf %88, %89 : vector<8x384xf32>
    %91 = vector.extract_strided_slice %82 {offsets = [0, 384], sizes = [8, 128], strides = [1, 1]} : vector<8x512xf32> to vector<8x128xf32>
    %92 = math.tanh %91 : vector<8x128xf32>
    %93 = vector.extract_strided_slice %90 {offsets = [0, 0], sizes = [8, 128], strides = [1, 1]} : vector<8x384xf32> to vector<8x128xf32>
    %94 = vector.extract_strided_slice %90 {offsets = [0, 128], sizes = [8, 128], strides = [1, 1]} : vector<8x384xf32> to vector<8x128xf32>
    %95 = vector.extract_strided_slice %90 {offsets = [0, 256], sizes = [8, 128], strides = [1, 1]} : vector<8x384xf32> to vector<8x128xf32>
    %96 = arith.mulf %94, %72 : vector<8x128xf32>
    %97 = arith.mulf %93, %92 : vector<8x128xf32>
    %98 = arith.addf %96, %97 : vector<8x128xf32>
    %99 = math.tanh %98 : vector<8x128xf32>
    %100 = arith.mulf %95, %99 : vector<8x128xf32>
    %101 = arith.truncf %100 : vector<8x128xf32> to vector<8x128xbf16>
    %c4_i32 = arith.constant 4 : i32
    %c8_i32_35 = arith.constant 8 : i32
    %102 = arith.muli %c4_i32, %c8_i32_35 : i32
    %103 = tpu.assume_multiple %102, 8 : i32
    %104 = arith.index_cast %103 : i32 to index
    %c0_36 = arith.constant 0 : index
    %105 = vector.load %arg7[%104, %c0_36] : memref<64x512xf32, #tpu.memory_space<vmem>>, vector<8x512xf32>
    %c0_37 = arith.constant 0 : index
    %c0_38 = arith.constant 0 : index
    %106 = vector.load %arg2[%c0_37, %c0_38] : memref<128x512xbf16, #tpu.memory_space<vmem>>, vector<128x512xbf16>
    %cst_39 = arith.constant dense<0.000000e+00> : vector<8x512xf32>
    %107 = tpu.matmul %101, %106, %cst_39 {dimension_numbers = #tpu.dot_dimension_numbers<[1], [0], [0], [1], [0, 0, 1, 1], [], []>} : vector<8x128xbf16>, vector<128x512xbf16>, vector<8x512xf32> -> vector<8x512xf32>
    %108 = arith.addf %105, %107 : vector<8x512xf32>
    %109 = vector.extract_strided_slice %108 {offsets = [0, 0], sizes = [8, 384], strides = [1, 1]} : vector<8x512xf32> to vector<8x384xf32>
    %cst_40 = arith.constant 5.000000e-01 : f32
    %110 = vector.broadcast %cst_40 : f32 to vector<8x384xf32>
    %111 = arith.mulf %110, %109 : vector<8x384xf32>
    %112 = math.tanh %111 : vector<8x384xf32>
    %cst_41 = arith.constant 5.000000e-01 : f32
    %113 = vector.broadcast %cst_41 : f32 to vector<8x384xf32>
    %114 = arith.mulf %113, %112 : vector<8x384xf32>
    %cst_42 = arith.constant 5.000000e-01 : f32
    %115 = vector.broadcast %cst_42 : f32 to vector<8x384xf32>
    %116 = arith.addf %114, %115 : vector<8x384xf32>
    %117 = vector.extract_strided_slice %108 {offsets = [0, 384], sizes = [8, 128], strides = [1, 1]} : vector<8x512xf32> to vector<8x128xf32>
    %118 = math.tanh %117 : vector<8x128xf32>
    %119 = vector.extract_strided_slice %116 {offsets = [0, 0], sizes = [8, 128], strides = [1, 1]} : vector<8x384xf32> to vector<8x128xf32>
    %120 = vector.extract_strided_slice %116 {offsets = [0, 128], sizes = [8, 128], strides = [1, 1]} : vector<8x384xf32> to vector<8x128xf32>
    %121 = vector.extract_strided_slice %116 {offsets = [0, 256], sizes = [8, 128], strides = [1, 1]} : vector<8x384xf32> to vector<8x128xf32>
    %122 = arith.mulf %120, %98 : vector<8x128xf32>
    %123 = arith.mulf %119, %118 : vector<8x128xf32>
    %124 = arith.addf %122, %123 : vector<8x128xf32>
    %125 = math.tanh %124 : vector<8x128xf32>
    %126 = arith.mulf %121, %125 : vector<8x128xf32>
    %127 = arith.truncf %126 : vector<8x128xf32> to vector<8x128xbf16>
    %c5_i32 = arith.constant 5 : i32
    %c8_i32_43 = arith.constant 8 : i32
    %128 = arith.muli %c5_i32, %c8_i32_43 : i32
    %129 = tpu.assume_multiple %128, 8 : i32
    %130 = arith.index_cast %129 : i32 to index
    %c0_44 = arith.constant 0 : index
    %131 = vector.load %arg7[%130, %c0_44] : memref<64x512xf32, #tpu.memory_space<vmem>>, vector<8x512xf32>
    %c0_45 = arith.constant 0 : index
    %c0_46 = arith.constant 0 : index
    %132 = vector.load %arg2[%c0_45, %c0_46] : memref<128x512xbf16, #tpu.memory_space<vmem>>, vector<128x512xbf16>
    %cst_47 = arith.constant dense<0.000000e+00> : vector<8x512xf32>
    %133 = tpu.matmul %127, %132, %cst_47 {dimension_numbers = #tpu.dot_dimension_numbers<[1], [0], [0], [1], [0, 0, 1, 1], [], []>} : vector<8x128xbf16>, vector<128x512xbf16>, vector<8x512xf32> -> vector<8x512xf32>
    %134 = arith.addf %131, %133 : vector<8x512xf32>
    %135 = vector.extract_strided_slice %134 {offsets = [0, 0], sizes = [8, 384], strides = [1, 1]} : vector<8x512xf32> to vector<8x384xf32>
    %cst_48 = arith.constant 5.000000e-01 : f32
    %136 = vector.broadcast %cst_48 : f32 to vector<8x384xf32>
    %137 = arith.mulf %136, %135 : vector<8x384xf32>
    %138 = math.tanh %137 : vector<8x384xf32>
    %cst_49 = arith.constant 5.000000e-01 : f32
    %139 = vector.broadcast %cst_49 : f32 to vector<8x384xf32>
    %140 = arith.mulf %139, %138 : vector<8x384xf32>
    %cst_50 = arith.constant 5.000000e-01 : f32
    %141 = vector.broadcast %cst_50 : f32 to vector<8x384xf32>
    %142 = arith.addf %140, %141 : vector<8x384xf32>
    %143 = vector.extract_strided_slice %134 {offsets = [0, 384], sizes = [8, 128], strides = [1, 1]} : vector<8x512xf32> to vector<8x128xf32>
    %144 = math.tanh %143 : vector<8x128xf32>
    %145 = vector.extract_strided_slice %142 {offsets = [0, 0], sizes = [8, 128], strides = [1, 1]} : vector<8x384xf32> to vector<8x128xf32>
    %146 = vector.extract_strided_slice %142 {offsets = [0, 128], sizes = [8, 128], strides = [1, 1]} : vector<8x384xf32> to vector<8x128xf32>
    %147 = vector.extract_strided_slice %142 {offsets = [0, 256], sizes = [8, 128], strides = [1, 1]} : vector<8x384xf32> to vector<8x128xf32>
    %148 = arith.mulf %146, %124 : vector<8x128xf32>
    %149 = arith.mulf %145, %144 : vector<8x128xf32>
    %150 = arith.addf %148, %149 : vector<8x128xf32>
    %151 = math.tanh %150 : vector<8x128xf32>
    %152 = arith.mulf %147, %151 : vector<8x128xf32>
    %153 = arith.truncf %152 : vector<8x128xf32> to vector<8x128xbf16>
    %c6_i32 = arith.constant 6 : i32
    %c8_i32_51 = arith.constant 8 : i32
    %154 = arith.muli %c6_i32, %c8_i32_51 : i32
    %155 = tpu.assume_multiple %154, 8 : i32
    %156 = arith.index_cast %155 : i32 to index
    %c0_52 = arith.constant 0 : index
    %157 = vector.load %arg7[%156, %c0_52] : memref<64x512xf32, #tpu.memory_space<vmem>>, vector<8x512xf32>
    %c0_53 = arith.constant 0 : index
    %c0_54 = arith.constant 0 : index
    %158 = vector.load %arg2[%c0_53, %c0_54] : memref<128x512xbf16, #tpu.memory_space<vmem>>, vector<128x512xbf16>
    %cst_55 = arith.constant dense<0.000000e+00> : vector<8x512xf32>
    %159 = tpu.matmul %153, %158, %cst_55 {dimension_numbers = #tpu.dot_dimension_numbers<[1], [0], [0], [1], [0, 0, 1, 1], [], []>} : vector<8x128xbf16>, vector<128x512xbf16>, vector<8x512xf32> -> vector<8x512xf32>
    %160 = arith.addf %157, %159 : vector<8x512xf32>
    %161 = vector.extract_strided_slice %160 {offsets = [0, 0], sizes = [8, 384], strides = [1, 1]} : vector<8x512xf32> to vector<8x384xf32>
    %cst_56 = arith.constant 5.000000e-01 : f32
    %162 = vector.broadcast %cst_56 : f32 to vector<8x384xf32>
    %163 = arith.mulf %162, %161 : vector<8x384xf32>
    %164 = math.tanh %163 : vector<8x384xf32>
    %cst_57 = arith.constant 5.000000e-01 : f32
    %165 = vector.broadcast %cst_57 : f32 to vector<8x384xf32>
    %166 = arith.mulf %165, %164 : vector<8x384xf32>
    %cst_58 = arith.constant 5.000000e-01 : f32
    %167 = vector.broadcast %cst_58 : f32 to vector<8x384xf32>
    %168 = arith.addf %166, %167 : vector<8x384xf32>
    %169 = vector.extract_strided_slice %160 {offsets = [0, 384], sizes = [8, 128], strides = [1, 1]} : vector<8x512xf32> to vector<8x128xf32>
    %170 = math.tanh %169 : vector<8x128xf32>
    %171 = vector.extract_strided_slice %168 {offsets = [0, 0], sizes = [8, 128], strides = [1, 1]} : vector<8x384xf32> to vector<8x128xf32>
    %172 = vector.extract_strided_slice %168 {offsets = [0, 128], sizes = [8, 128], strides = [1, 1]} : vector<8x384xf32> to vector<8x128xf32>
    %173 = vector.extract_strided_slice %168 {offsets = [0, 256], sizes = [8, 128], strides = [1, 1]} : vector<8x384xf32> to vector<8x128xf32>
    %174 = arith.mulf %172, %150 : vector<8x128xf32>
    %175 = arith.mulf %171, %170 : vector<8x128xf32>
    %176 = arith.addf %174, %175 : vector<8x128xf32>
    %177 = math.tanh %176 : vector<8x128xf32>
    %178 = arith.mulf %173, %177 : vector<8x128xf32>
    %179 = arith.truncf %178 : vector<8x128xf32> to vector<8x128xbf16>
    %c7_i32 = arith.constant 7 : i32
    %c8_i32_59 = arith.constant 8 : i32
    %180 = arith.muli %c7_i32, %c8_i32_59 : i32
    %181 = tpu.assume_multiple %180, 8 : i32
    %182 = arith.index_cast %181 : i32 to index
    %c0_60 = arith.constant 0 : index
    %183 = vector.load %arg7[%182, %c0_60] : memref<64x512xf32, #tpu.memory_space<vmem>>, vector<8x512xf32>
    %c0_61 = arith.constant 0 : index
    %c0_62 = arith.constant 0 : index
    %184 = vector.load %arg2[%c0_61, %c0_62] : memref<128x512xbf16, #tpu.memory_space<vmem>>, vector<128x512xbf16>
    %cst_63 = arith.constant dense<0.000000e+00> : vector<8x512xf32>
    %185 = tpu.matmul %179, %184, %cst_63 {dimension_numbers = #tpu.dot_dimension_numbers<[1], [0], [0], [1], [0, 0, 1, 1], [], []>} : vector<8x128xbf16>, vector<128x512xbf16>, vector<8x512xf32> -> vector<8x512xf32>
    %186 = arith.addf %183, %185 : vector<8x512xf32>
    %187 = vector.extract_strided_slice %186 {offsets = [0, 0], sizes = [8, 384], strides = [1, 1]} : vector<8x512xf32> to vector<8x384xf32>
    %cst_64 = arith.constant 5.000000e-01 : f32
    %188 = vector.broadcast %cst_64 : f32 to vector<8x384xf32>
    %189 = arith.mulf %188, %187 : vector<8x384xf32>
    %190 = math.tanh %189 : vector<8x384xf32>
    %cst_65 = arith.constant 5.000000e-01 : f32
    %191 = vector.broadcast %cst_65 : f32 to vector<8x384xf32>
    %192 = arith.mulf %191, %190 : vector<8x384xf32>
    %cst_66 = arith.constant 5.000000e-01 : f32
    %193 = vector.broadcast %cst_66 : f32 to vector<8x384xf32>
    %194 = arith.addf %192, %193 : vector<8x384xf32>
    %195 = vector.extract_strided_slice %186 {offsets = [0, 384], sizes = [8, 128], strides = [1, 1]} : vector<8x512xf32> to vector<8x128xf32>
    %196 = math.tanh %195 : vector<8x128xf32>
    %197 = vector.extract_strided_slice %194 {offsets = [0, 0], sizes = [8, 128], strides = [1, 1]} : vector<8x384xf32> to vector<8x128xf32>
    %198 = vector.extract_strided_slice %194 {offsets = [0, 128], sizes = [8, 128], strides = [1, 1]} : vector<8x384xf32> to vector<8x128xf32>
    %199 = vector.extract_strided_slice %194 {offsets = [0, 256], sizes = [8, 128], strides = [1, 1]} : vector<8x384xf32> to vector<8x128xf32>
    %200 = arith.mulf %198, %176 : vector<8x128xf32>
    %201 = arith.mulf %197, %196 : vector<8x128xf32>
    %202 = arith.addf %200, %201 : vector<8x128xf32>
    %203 = math.tanh %202 : vector<8x128xf32>
    %204 = arith.mulf %199, %203 : vector<8x128xf32>
    %205 = arith.truncf %204 : vector<8x128xf32> to vector<8x128xbf16>
    %c7_i32_67 = arith.constant 7 : i32
    %206 = arith.extf %205 : vector<8x128xbf16> to vector<8x128xf32>
    %c0_68 = arith.constant 0 : index
    %c0_69 = arith.constant 0 : index
    %207 = vector.load %arg4[%c0_68, %c0_69] : memref<1x128xf32, #tpu.memory_space<vmem>>, vector<1x128xf32>
    %208 = vector.broadcast %207 : vector<1x128xf32> to vector<8x128xf32>
    %209 = arith.mulf %206, %208 : vector<8x128xf32>
    %cst_70 = arith.constant dense<0.000000e+00> : vector<8xf32>
    %210 = vector.multi_reduction <add>, %209, %cst_70 [1] : vector<8x128xf32> to vector<8xf32>
    %211 = vector.shape_cast %210 : vector<8xf32> to vector<8x1xf32>
    %c0_71 = arith.constant 0 : index
    %c0_72 = arith.constant 0 : index
    %212 = vector.load %arg5[%c0_71, %c0_72] : memref<1x1xf32, #tpu.memory_space<vmem>>, vector<1x1xf32>
    %213 = vector.broadcast %212 : vector<1x1xf32> to vector<8x1xf32>
    %214 = arith.addf %211, %213 : vector<8x1xf32>
    %215 = arith.negf %214 : vector<8x1xf32>
    %216 = math.exp %215 : vector<8x1xf32>
    %cst_73 = arith.constant 1.000000e+00 : f32
    %217 = vector.broadcast %cst_73 : f32 to vector<8x1xf32>
    %218 = arith.addf %217, %216 : vector<8x1xf32>
    %219 = arith.divf %217, %218 : vector<8x1xf32>
    %c0_74 = arith.constant 0 : index
    %c0_75 = arith.constant 0 : index
    %220 = vector.load %arg6[%c0_74, %c0_75] : memref<8x1xf32, #tpu.memory_space<vmem>>, vector<8x1xf32>
    tpu.vector_store %arg6[%c0_74, %c0_75], %219 {strides = array<i32>} : memref<8x1xf32, #tpu.memory_space<vmem>>, vector<8x1xf32>,
    return
  }
}

</mosaic_0001>

<bundles_post_ra>
// kernel: tpu_custom_call.1
= control target key start
LH: loop header
LB: loop body
LE: loop exit
PB: predicated region body
PF: predicated region fallthrough
CT: control target
= control target key end

     0   :  { %s2181_s0 = inlined_call_operand.vmem [shape: f32[64,4], index: 0, kind: input, shape index: {}]   ;;  %s2182_s1 = inlined_call_operand.vmem [shape: f32[4,512], index: 1, kind: input, shape index: {}]   ;;  %s2183_s2 = inlined_call_operand.hbm [shape: bf16[128,512], index: 2, kind: input, shape index: {}]   ;;  %s2184_s3 = inlined_call_operand.vmem [shape: f32[1,512], index: 3, kind: input, shape index: {}]   ;;  %s2185_s4 = inlined_call_operand.vmem [shape: f32[1,128], index: 4, kind: input, shape index: {}]   ;;  %s2186_s5 = inlined_call_operand.<no memory space> [shape: f32[1,1], index: 5, kind: input, shape index: {}]   ;;  %s2187_s6 = inlined_call_operand.vmem [shape: f32[8,1], index: 6, kind: output, shape index: {}]  }
   0x1   :  { %v11_v0 = vstv %s2186_s5 }
   0x2   :  { %12 = vst [vmem:[#allocation3] sm:$0x1] %v11_v0 }
   0x3   :  { %13 = vsyncpa [#allocation5], 0  ;;  %s1633_s23 = smov [#allocation4]   ;;  %s1609_s27 = scalar_lea.hbm %s2183_s2, 4096 }
   0x4   :  { %s23_s24 = sshll.u32 %s1633_s23, 4  ;;  %p1610_p0 = scmp.ne.s32.totalorder %s2183_s2, %s1609_s27  ;;  %s24_s24 = int_to_ptr.vmem [resolvable:$true] %s23_s24 }
   0x5   :  { %p1613_p1 = scmp.lt.u32.totalorder %s1609_s27, %s2183_s2 }
   0x7   :  { %p1615_p2 = pnand %p1613_p1, %p1610_p0 }
   0x9   :  { %1618 = shalt.err (!%p1615_p2)
}
   0xa   :  { %s1619_s5 = scalar_lea.vmem %s24_s24, 4096  ;;  %p1624_p4 = scmp.lt.s32.totalorder %s24_s24, %s24_s24 }
   0xb   :  { %p1620_p3 = scmp.ne.s32.totalorder %s24_s24, %s1619_s5  ;;  %p1625_p5 = scmp.lt.s32.totalorder %s1619_s5, %s1619_s5 }
   0xd   :  { %p1626_p6 = por %p1625_p5, %p1624_p4 }
   0xf   :  { %p1627_p7 = pnand %p1626_p6, %p1620_p3 }
  0x11   :  { %1630 = shalt.err (!%p1627_p7)
}
  0x12   :  { %s1634_s8 = smov 256   ;;  %s1635_s9 = smov 16  }
  0x13   :  { %29 = dma.hbm_to_vmem [thread:$0]  %s2183_s2, 4096, %s24_s24, [#allocation5], %s1634_s8, %s1634_s8, %s1635_s9  }
  0x14   :  { %1631 = dma.done.wait [#allocation5], 4096  }
  0x15   :  { %1632 = vsyncadd [#allocation5], 4294963200  ;;  %v1636_v1 = vmov 0.0   ;;  %v48_v2 = vld [vmem:[%s2182_s1] sm:$0xff]  ;;  %vm101_vm0 = vcmask 1043456   ;;  %v49_v3 = vld [vmem:[%s2182_s1 + $0x8] sm:$0xff]  ;;  %v52_v47 = vlaneseq }
  0x16   :  { %174 = vmatprep.mubr.f32.mxu0 %v1636_v1  ;;  %287 = vmatprep.mubr.f32.mxu1 %v1636_v1  ;;  %v74_v4 = vcombine.high %v48_v2, %v48_v2  ;;  %v40_v5 = vld [vmem:[%s2181_s0] sm:$0xff]  ;;  %v75_v6 = vcombine.high %v49_v3, %v49_v3  ;;  %vm76_vm1 = vcmask 31744   ;;  %v1709_v10 = vld [vmem:[#allocation4 + $0x8] ss:$16 sps:$4 sm:$0xff]   ;;  %v42_v16 = vld [vmem:[%s2181_s0 + $0x10] sm:$0xff]  ;;  %v2188_v46 = vmov 0  }
  0x17   :  { %v1703_v7 = vld [vmem:[#allocation4 + $0x4] ss:$16 sps:$4 sm:$0xff]   ;;  %v1705_v8 = vld [vmem:[#allocation4 + $0xc] ss:$16 sps:$4 sm:$0xff]   ;;  %v1707_v9 = vld [vmem:[#allocation4] ss:$16 sps:$4 sm:$0xff]  }
  0x18   :  { %1399 = vmatprep.subr.msk.mxu0 %vm101_vm0, %v74_v4  ;;  %1409 = vmatprep.subr.msk.mxu1 %vm101_vm0, %v75_v6  ;;  %v41_v11 = vld [vmem:[%s2181_s0 + $0x8] sm:$0xff]  ;;  %v1724_v14 = vld [vmem:[#allocation4 + $0x20] ss:$16 sps:$4 sm:$0xff]   ;;  %v43_v21 = vld [vmem:[%s2181_s0 + $0x18] sm:$0xff]  ;;  %v1850_v48 = vshrl.u32 %v52_v47, 7  ;;  %vm1385_vm2 = vcmask 7168  }
  0x19   :  { %1400 = vmatpush1.msk.msra.mxu0 %vm101_vm0, %v48_v2  ;;  %1410 = vmatpush1.msk.msra.mxu1 %vm101_vm0, %v49_v3  ;;  %v1718_v12 = vld [vmem:[#allocation4 + $0x24] ss:$16 sps:$4 sm:$0xff]   ;;  %v1720_v13 = vld [vmem:[#allocation4 + $0x2c] ss:$16 sps:$4 sm:$0xff]   ;;  %v1726_v15 = vld [vmem:[#allocation4 + $0x28] ss:$16 sps:$4 sm:$0xff]  }
  0x1a   :  { %1401 = vmatmul.mubr.msk.f32.vlgmr.msra.gmra.mrb[0].mxu0 %vm76_vm1, %v40_v5  ;;  %1411 = vmatmul.mubr.msk.f32.vlgmr.msra.gmra.mrb[0].mxu1 %vm76_vm1, %v40_v5  ;;  %v1737_v17 = vld [vmem:[#allocation4 + $0x44] ss:$16 sps:$4 sm:$0xff]   ;;  %v1739_v18 = vld [vmem:[#allocation4 + $0x4c] ss:$16 sps:$4 sm:$0xff]   ;;  %v1743_v19 = vld [vmem:[#allocation4 + $0x40] ss:$16 sps:$4 sm:$0xff]  }
  0x1b   :  { %180 = vmatprep.mubr.f32.mxu0 %v1636_v1  ;;  %293 = vmatprep.mubr.f32.mxu1 %v1636_v1  ;;  %v1745_v20 = vld [vmem:[#allocation4 + $0x48] ss:$16 sps:$4 sm:$0xff]   ;;  %v1756_v22 = vld [vmem:[#allocation4 + $0x64] ss:$16 sps:$4 sm:$0xff]   ;;  %v1758_v23 = vld [vmem:[#allocation4 + $0x6c] ss:$16 sps:$4 sm:$0xff]  }
  0x1c   :  { %583 = vmatprep.subr.bf16.mxu0 %v1703_v7  ;;  %624 = vmatprep.subr.bf16.mxu1 %v1705_v8  ;;  %v1762_v24 = vld [vmem:[#allocation4 + $0x60] ss:$16 sps:$4 sm:$0xff]   ;;  %v1764_v25 = vld [vmem:[#allocation4 + $0x68] ss:$16 sps:$4 sm:$0xff]   ;;  %v1775_v27 = vld [vmem:[#allocation4 + $0x84] ss:$16 sps:$4 sm:$0xff]  }
  0x1d   :  { %584 = vmatpush1.bf16.msra.mxu0 %v1707_v9  ;;  %625 = vmatpush1.bf16.msra.mxu1 %v1709_v10  ;;  %v44_v26 = vld [vmem:[%s2181_s0 + $0x20] sm:$0xff]  ;;  %v1783_v30 = vld [vmem:[#allocation4 + $0x88] ss:$16 sps:$4 sm:$0xff]   ;;  %v46_v37 = vld [vmem:[%s2181_s0 + $0x30] sm:$0xff]  ;;  %v54_v49 = vsub.s32 0, %v1850_v48  ;;  %v66_v51 = vsub.s32 3, %v1850_v48 }
  0x1e   :  { %1402 = vmatmul.mubr.msk.f32.gmra.mrb[2].mxu0 %vm76_vm1, %v41_v11  ;;  %1412 = vmatmul.mubr.msk.f32.gmra.mrb[2].mxu1 %vm76_vm1, %v41_v11  ;;  %v1777_v28 = vld [vmem:[#allocation4 + $0x8c] ss:$16 sps:$4 sm:$0xff]   ;;  %v1781_v29 = vld [vmem:[#allocation4 + $0x80] ss:$16 sps:$4 sm:$0xff]   ;;  %v1792_v32 = vld [vmem:[#allocation4 + $0xa4] ss:$16 sps:$4 sm:$0xff]  }
  0x1f   :  { %585 = vmatprep.subr.bf16.mxu0 %v1718_v12  ;;  %626 = vmatprep.subr.bf16.mxu1 %v1720_v13  ;;  %v45_v31 = vld [vmem:[%s2181_s0 + $0x28] sm:$0xff]  ;;  %v1794_v33 = vld [vmem:[#allocation4 + $0xa0] ss:$16 sps:$4 sm:$0xff]   ;;  %v47_v42 = vld [vmem:[%s2181_s0 + $0x38] sm:$0xff]  ;;  %v62_v53 = vsub.s32 2, %v1850_v48 }
  0x20   :  { %186 = vmatprep.mubr.f32.mxu0 %v1636_v1  ;;  %299 = vmatprep.mubr.f32.mxu1 %v1636_v1  ;;  %v1798_v34 = vld [vmem:[#allocation4 + $0xac] ss:$16 sps:$4 sm:$0xff]   ;;  %v1800_v35 = vld [vmem:[#allocation4 + $0xa8] ss:$16 sps:$4 sm:$0xff]   ;;  %v1804_v36 = vld [vmem:[#allocation4 + $0xc4] ss:$16 sps:$4 sm:$0xff]  }
  0x21   :  { %586 = vmatpush1.bf16.msra.mxu0 %v1724_v14  ;;  %627 = vmatpush1.bf16.msra.mxu1 %v1726_v15  ;;  %v1811_v38 = vld [vmem:[#allocation4 + $0xcc] ss:$16 sps:$4 sm:$0xff]   ;;  %v1815_v39 = vld [vmem:[#allocation4 + $0xc0] ss:$16 sps:$4 sm:$0xff]   ;;  %v1817_v40 = vld [vmem:[#allocation4 + $0xc8] ss:$16 sps:$4 sm:$0xff]  }
  0x22   :  { %1403 = vmatmul.mubr.msk.f32.gmra.mrb[4].mxu0 %vm76_vm1, %v42_v16  ;;  %1413 = vmatmul.mubr.msk.f32.gmra.mrb[4].mxu1 %vm76_vm1, %v42_v16  ;;  %v1823_v41 = vld [vmem:[#allocation4 + $0xe4] ss:$16 sps:$4 sm:$0xff]   ;;  %v1830_v43 = vld [vmem:[#allocation4 + $0xec] ss:$16 sps:$4 sm:$0xff]   ;;  %v1834_v44 = vld [vmem:[#allocation4 + $0xe0] ss:$16 sps:$4 sm:$0xff]  }
  0x23   :  { %587 = vmatprep.subr.bf16.mxu0 %v1737_v17  ;;  %628 = vmatprep.subr.bf16.mxu1 %v1739_v18  ;;  %v1836_v45 = vld [vmem:[#allocation4 + $0xe8] ss:$16 sps:$4 sm:$0xff]   ;;  %v1856_v50 = vld [vmem:[%s2184_s3] sm:$0xf] }
  0x24   :  { %192 = vmatprep.mubr.f32.mxu0 %v1636_v1  ;;  %305 = vmatprep.mubr.f32.mxu1 %v1636_v1  ;;  %v1860_v52 = vrot.slane %v1856_v50, %v54_v49  ;;  %v1864_v54 = vrot.slane %v1856_v50, %v66_v51  ;;  %v1868_v60 = vrot.slane %v1856_v50, %v62_v53 }
  0x25   :  { %588 = vmatpush1.bf16.msra.mxu0 %v1743_v19  ;;  %629 = vmatpush1.bf16.msra.mxu1 %v1745_v20 }
  0x26   :  { %1404 = vmatmul.mubr.msk.f32.gmra.mrb[6].mxu0 %vm76_vm1, %v43_v21  ;;  %1414 = vmatmul.mubr.msk.f32.gmra.mrb[6].mxu1 %vm76_vm1, %v43_v21 }
  0x27   :  { %589 = vmatprep.subr.bf16.mxu0 %v1756_v22  ;;  %630 = vmatprep.subr.bf16.mxu1 %v1758_v23 }
  0x28   :  { %198 = vmatprep.mubr.f32.mxu0 %v1636_v1  ;;  %311 = vmatprep.mubr.f32.mxu1 %v1636_v1 }
  0x29   :  { %590 = vmatpush1.bf16.msra.mxu0 %v1762_v24  ;;  %631 = vmatpush1.bf16.msra.mxu1 %v1764_v25 }
  0x2a   :  { %1405 = vmatmul.mubr.msk.f32.gmra.mrb[8].mxu0 %vm76_vm1, %v44_v26  ;;  %1415 = vmatmul.mubr.msk.f32.gmra.mrb[8].mxu1 %vm76_vm1, %v44_v26 }
  0x2b   :  { %591 = vmatprep.subr.bf16.mxu0 %v1775_v27  ;;  %632 = vmatprep.subr.bf16.mxu1 %v1777_v28 }
  0x2c   :  { %204 = vmatprep.mubr.f32.mxu0 %v1636_v1  ;;  %317 = vmatprep.mubr.f32.mxu1 %v1636_v1 }
  0x2d   :  { %592 = vmatpush1.bf16.msra.mxu0 %v1781_v29  ;;  %633 = vmatpush1.bf16.msra.mxu1 %v1783_v30 }
  0x2e   :  { %1406 = vmatmul.mubr.msk.f32.gmra.mrb[10].mxu0 %vm76_vm1, %v45_v31  ;;  %593 = vmatprep.subr.bf16.mxu0 %v1792_v32 }
  0x2f   :  { %1416 = vmatmul.mubr.msk.f32.gmra.mrb[10].mxu1 %vm76_vm1, %v45_v31  ;;  %634 = vmatprep.subr.bf16.mxu1 %v1798_v34 }
  0x30   :  { %210 = vmatprep.mubr.f32.mxu0 %v1636_v1  ;;  %323 = vmatprep.mubr.f32.mxu1 %v1636_v1 }
  0x31   :  { %594 = vmatpush1.bf16.msra.mxu0 %v1794_v33  ;;  %635 = vmatpush1.bf16.msra.mxu1 %v1800_v35 }
  0x32   :  { %1407 = vmatmul.mubr.msk.f32.gmra.mrb[12].mxu0 %vm76_vm1, %v46_v37  ;;  %595 = vmatprep.subr.bf16.mxu0 %v1804_v36 }
  0x33   :  { %1417 = vmatmul.mubr.msk.f32.gmra.mrb[12].mxu1 %vm76_vm1, %v46_v37  ;;  %636 = vmatprep.subr.bf16.mxu1 %v1811_v38 }
  0x34   :  { %216 = vmatprep.mubr.f32.mxu0 %v1636_v1  ;;  %329 = vmatprep.mubr.f32.mxu1 %v1636_v1 }
  0x35   :  { %596 = vmatpush1.bf16.msra.mxu0 %v1815_v39  ;;  %637 = vmatpush1.bf16.msra.mxu1 %v1817_v40 }
  0x36   :  { %1408 = vmatmul.mubr.msk.f32.gmra.mrb[14].mxu0 %vm76_vm1, %v47_v42  ;;  %597 = vmatprep.subr.bf16.mxu0 %v1823_v41 }
  0x37   :  { %1418 = vmatmul.mubr.msk.f32.gmra.mrb[14].mxu1 %vm76_vm1, %v47_v42  ;;  %638 = vmatprep.subr.bf16.mxu1 %v1830_v43  ;;  %v58_v42 = vsub.s32 1, %v1850_v48 }
  0x38   :  { %615 = vmatprep.mubr.bf16.mxu0 %v2188_v46  ;;  %656 = vmatprep.mubr.bf16.mxu1 %v2188_v46 }
  0x39   :  { %598 = vmatpush1.bf16.msra.mxu0 %v1834_v44  ;;  %639 = vmatpush1.bf16.msra.mxu1 %v1836_v45  ;;  %v59_v53 = vrot.slane %v1856_v50, %v58_v42 }
  0x3a   :  { %695 = vmatprep.subr.bf16.mxu0 %v1703_v7  ;;  %736 = vmatprep.subr.bf16.mxu1 %v1705_v8 }
  0xed   :  { %v176_v55 = vpop.f32.mrb[0].mxu0  ;;  %v289_v56 = vpop.f32.mrb[0].mxu1 }
  0xee   :  { %v177_v57 = vadd.f32 %v176_v55, %v1860_v52  ;;  %v178_v58 = vpop.f32.mrb[1].mxu0  ;;  %v291_v59 = vpop.f32.mrb[1].mxu1  ;;  %v290_v63 = vadd.f32 %v289_v56, %v1868_v60 }
  0xef   :  { %v292_v62 = vadd.f32 %v291_v59, %v1864_v54 }
  0xf0   :  { %v371_v61 = vmul.f32 0.5, %v177_v57  ;;  %v372_v0 = vmul.f32 0.5, %v290_v63 }
  0xf1   :  { %v182_v37 = vpop.f32.mrb[2].mxu0  ;;  %v295_v47 = vpop.f32.mrb[2].mxu1 }
  0xf2   :  { %1509 = vtanh.f32 %v371_v61  ;;  %v184_v49 = vpop.f32.mrb[3].mxu0  ;;  %v297_v51 = vpop.f32.mrb[3].mxu1 }
  0xf3   :  { %1511 = vtanh.f32 %v292_v62 }
  0xf4   :  { %1513 = vtanh.f32 %v372_v0 }
  0xf5   :  { %v1911_v55 = vpop.f32.mrb[4].mxu0  ;;  %v1913_v56 = vpop.f32.mrb[4].mxu1 }
  0xf6   :  { %v190_v57 = vpop.f32.mrb[5].mxu0  ;;  %v1915_v58 = vpop.f32.mrb[5].mxu1 }
  0xf7   :  { %v1917_v59 = vadd.f32 %v190_v57, %v59_v53 }
  0xf9   :  { %v1919_v61 = vpop.f32.mrb[6].mxu0  ;;  %v1921_v62 = vpop.f32.mrb[6].mxu1 }
  0xfa   :  { %2190 = vst [vmem:[#allocation7_spill] sm:$0xff] %v1921_v62  ;;  %v196_v63 = vpop.f32.mrb[7].mxu0  ;;  %v1923_v48 = vpop.f32.mrb[7].mxu1 }
  0xfb   :  { %2191 = vst [vmem:[#allocation8_spill] sm:$0xff] %v1923_v48  ;;  %v1925_v0 = vadd.f32 %v196_v63, %v59_v53 }
  0xfc   :  { %v1510_v1 = vpop.eup %1509 }
  0xfd   :  { %v375_v2 = vmul.f32 0.5, %v1510_v1  ;;  %v1512_v3 = vpop.eup %1511  ;;  %2192 = vst [vmem:[#allocation9_spill] sm:$0xff] %v1925_v0  ;;  %v1927_v1 = vpop.f32.mrb[8].mxu0 }
  0xfe   :  { %v1514_v6 = vpop.eup %1513  ;;  %2193 = vst [vmem:[#allocation10_spill] sm:$0xff] %v1927_v1  ;;  %v1929_v50 = vpop.f32.mrb[8].mxu1 }
  0xff   :  { %v377_v4 = vadd.f32 0.5, %v375_v2  ;;  %v376_v11 = vmul.f32 0.5, %v1514_v6  ;;  %2194 = vst [vmem:[#allocation11_spill] sm:$0xff] %v1929_v50  ;;  %v202_v2 = vpop.f32.mrb[9].mxu0 }
 0x101   :  { %v1872_v5 = vmul.f32 %v1512_v3, %v377_v4  ;;  %v378_v16 = vadd.f32 0.5, %v376_v11  ;;  %v1931_v3 = vpop.f32.mrb[9].mxu1  ;;  %v1933_v4 = vadd.f32 %v202_v2, %v59_v53  ;;  %v1935_v6 = vpop.f32.mrb[10].mxu0 }
 0x102   :  { %2195 = vst [vmem:[#allocation12_spill] sm:$0xff] %v1931_v3  ;;  %2197 = vst [vmem:[#allocation14_spill] sm:$0xff] %v1935_v6  ;;  %v208_v11 = vpop.f32.mrb[11].mxu0 }
 0x103   :  { %1515 = vtanh.f32 %v1872_v5  ;;  %2196 = vst [vmem:[#allocation13_spill] sm:$0xff] %v1933_v4 }
 0x10d   :  { %v1516_v21 = vpop.eup %1515 }
 0x10e   :  { %v382_v26 = vmul.f32 %v1516_v21, %v378_v16  ;;  %v1937_v16 = vpop.f32.mrb[10].mxu1  ;;  %v1939_v21 = vadd.f32 %v208_v11, %v59_v53 }
 0x10f   :  { %2198 = vst [vmem:[#allocation15_spill] sm:$0xff] %v1937_v16 }
 0x110   :  { %v383_v31 = vpack.c.bf16 %v382_v26, %v382_v26  ;;  %2199 = vst [vmem:[#allocation16_spill] sm:$0xff] %v1939_v21  ;;  %v1941_v26 = vpop.f32.mrb[11].mxu1  ;;  %v183_v21 = vadd.f32 %v182_v37, %v1860_v52 }
 0x111   :  { %2200 = vst [vmem:[#allocation17_spill] sm:$0xff] %v1941_v26  ;;  %v1945_v57 = vpop.f32.mrb[12].mxu1  ;;  %v185_v26 = vadd.f32 %v184_v49, %v59_v53 }
 0x112   :  { %616 = vmatmul.mubr.bf16.vlgmr.msra.gmra.mrb[16].mxu0 %v383_v31  ;;  %657 = vmatmul.mubr.bf16.vlgmr.msra.gmra.mrb[16].mxu1 %v383_v31  ;;  %v1943_v31 = vpop.f32.mrb[12].mxu0  ;;  %2202 = vst [vmem:[#allocation19_spill] sm:$0xff] %v1945_v57  ;;  %v298_v57 = vadd.f32 %v297_v51, %v1864_v54 }
 0x113   :  { %696 = vmatpush1.bf16.msra.mxu0 %v1707_v9  ;;  %737 = vmatpush1.bf16.msra.mxu1 %v1709_v10  ;;  %2201 = vst [vmem:[#allocation18_spill] sm:$0xff] %v1943_v31  ;;  %v214_v42 = vpop.f32.mrb[13].mxu0  ;;  %v296_v31 = vadd.f32 %v295_v47, %v1868_v60 }
 0x114   :  { %697 = vmatprep.subr.bf16.mxu0 %v1718_v12  ;;  %738 = vmatprep.subr.bf16.mxu1 %v1720_v13  ;;  %v1947_v63 = vadd.f32 %v214_v42, %v59_v53  ;;  %v1951_v2 = vpop.f32.mrb[14].mxu0 }
 0x115   :  { %727 = vmatprep.mubr.bf16.mxu0 %v2188_v46  ;;  %768 = vmatprep.mubr.bf16.mxu1 %v2188_v46  ;;  %v1949_v46 = vpop.f32.mrb[13].mxu1  ;;  %2205 = vst [vmem:[#allocation22_spill] sm:$0xff] %v1951_v2  ;;  %v220_v4 = vpop.f32.mrb[15].mxu0 }
 0x116   :  { %2203 = vst [vmem:[#allocation20_spill] sm:$0xff] %v1947_v63  ;;  %2204 = vst [vmem:[#allocation21_spill] sm:$0xff] %v1949_v46  ;;  %v1953_v6 = vpop.f32.mrb[14].mxu1  ;;  %v1955_v3 = vadd.f32 %v220_v4, %v59_v53 }
 0x117   :  { %698 = vmatpush1.bf16.msra.mxu0 %v1724_v14  ;;  %739 = vmatpush1.bf16.msra.mxu1 %v1726_v15  ;;  %2206 = vst [vmem:[#allocation23_spill] sm:$0xff] %v1953_v6  ;;  %v1957_v11 = vpop.f32.mrb[15].mxu1 }
 0x118   :  { %699 = vmatprep.subr.bf16.mxu0 %v1737_v17  ;;  %740 = vmatprep.subr.bf16.mxu1 %v1739_v18  ;;  %2207 = vst [vmem:[#allocation24_spill] sm:$0xff] %v1955_v3  ;;  %2208 = vst [vmem:[#allocation25_spill] sm:$0xff] %v1957_v11 }
 0x11b   :  { %700 = vmatpush1.bf16.msra.mxu0 %v1743_v19  ;;  %741 = vmatpush1.bf16.msra.mxu1 %v1745_v20 }
 0x11c   :  { %701 = vmatprep.subr.bf16.mxu0 %v1756_v22  ;;  %742 = vmatprep.subr.bf16.mxu1 %v1758_v23 }
 0x11f   :  { %702 = vmatpush1.bf16.msra.mxu0 %v1762_v24  ;;  %743 = vmatpush1.bf16.msra.mxu1 %v1764_v25 }
 0x120   :  { %703 = vmatprep.subr.bf16.mxu0 %v1775_v27  ;;  %744 = vmatprep.subr.bf16.mxu1 %v1777_v28 }
 0x123   :  { %704 = vmatpush1.bf16.msra.mxu0 %v1781_v29  ;;  %745 = vmatpush1.bf16.msra.mxu1 %v1783_v30 }
 0x124   :  { %705 = vmatprep.subr.bf16.mxu0 %v1792_v32  ;;  %746 = vmatprep.subr.bf16.mxu1 %v1798_v34 }
 0x127   :  { %706 = vmatpush1.bf16.msra.mxu0 %v1794_v33  ;;  %747 = vmatpush1.bf16.msra.mxu1 %v1800_v35 }
 0x128   :  { %707 = vmatprep.subr.bf16.mxu0 %v1804_v36  ;;  %748 = vmatprep.subr.bf16.mxu1 %v1811_v38 }
 0x12b   :  { %708 = vmatpush1.bf16.msra.mxu0 %v1815_v39  ;;  %749 = vmatpush1.bf16.msra.mxu1 %v1817_v40 }
 0x12c   :  { %709 = vmatprep.subr.bf16.mxu0 %v1823_v41  ;;  %750 = vmatprep.subr.bf16.mxu1 %v1830_v43 }
 0x12f   :  { %710 = vmatpush1.bf16.msra.mxu0 %v1834_v44  ;;  %751 = vmatpush1.bf16.msra.mxu1 %v1836_v45 }
 0x130   :  { %807 = vmatprep.subr.bf16.mxu0 %v1703_v7  ;;  %848 = vmatprep.subr.bf16.mxu1 %v1705_v8 }
 0x1e5   :  { %v617_v42 = vpop.f32.mrb[16].mxu0  ;;  %v658_v63 = vpop.f32.mrb[16].mxu1 }
 0x1e6   :  { %v665_v16 = vadd.f32 %v617_v42, %v183_v21  ;;  %v667_v46 = vadd.f32 %v658_v63, %v296_v31  ;;  %v619_v50 = vpop.f32.mrb[17].mxu0  ;;  %v660_v2 = vpop.f32.mrb[17].mxu1 }
 0x1e7   :  { %v666_v1 = vadd.f32 %v619_v50, %v185_v26  ;;  %v668_v0 = vadd.f32 %v660_v2, %v298_v57  ;;  %v621_v6 = vpop.f32.mrb[18].mxu0  ;;  %v662_v4 = vpop.f32.mrb[18].mxu1  ;;  %v302_v57 = vadd.f32 %v1913_v56, %v1868_v60  ;;  %v304_v2 = vadd.f32 %v1915_v58, %v1864_v54 }
 0x1e8   :  { %v669_v3 = vmul.f32 0.5, %v665_v16  ;;  %v622_v48 = vpop.f32.mrb[19].mxu0  ;;  %v663_v11 = vpop.f32.mrb[19].mxu1  ;;  %v671_v37 = vmul.f32 0.5, %v667_v46  ;;  %v189_v16 = vadd.f32 %v1911_v55, %v1860_v52 }
 0x1e9   :  { %v670_v62 = vmul.f32 0.5, %v666_v1 }
 0x1ea   :  { %1517 = vtanh.f32 %v669_v3 }
 0x1eb   :  { %1519 = vtanh.f32 %v670_v62 }
 0x1ec   :  { %1521 = vtanh.f32 %v668_v0 }
 0x1ed   :  { %1523 = vtanh.f32 %v671_v37 }
 0x1f4   :  { %v1518_v47 = vpop.eup %1517 }
 0x1f5   :  { %v675_v49 = vmul.f32 0.5, %v1518_v47  ;;  %v1520_v51 = vpop.eup %1519 }
 0x1f6   :  { %v676_v21 = vmul.f32 0.5, %v1520_v51  ;;  %v1522_v31 = vpop.eup %1521 }
 0x1f7   :  { %v678_v53 = vadd.f32 0.5, %v675_v49  ;;  %v1524_v48 = vpop.eup %1523 }
 0x1f8   :  { %v679_v63 = vadd.f32 0.5, %v676_v21  ;;  %v677_v1 = vmul.f32 0.5, %v1524_v48 }
 0x1f9   :  { %v683_v50 = vmul.f32 %v1522_v31, %v678_v53 }
 0x1fa   :  { %v682_v6 = vmul.f32 %v679_v63, %v1872_v5  ;;  %v680_v62 = vadd.f32 0.5, %v677_v1  ;;  %v2209_v5 = vmov 0  }
 0x1fc   :  { %v1963_v26 = vadd.f32 %v683_v50, %v682_v6 }
 0x1fe   :  { %1525 = vtanh.f32 %v1963_v26 }
 0x208   :  { %v1526_v0 = vpop.eup %1525 }
 0x209   :  { %v686_v46 = vmul.f32 %v1526_v0, %v680_v62 }
 0x20b   :  { %v687_v3 = vpack.c.bf16 %v686_v46, %v686_v46 }
 0x20d   :  { %728 = vmatmul.mubr.bf16.vlgmr.msra.gmra.mrb[20].mxu0 %v687_v3  ;;  %769 = vmatmul.mubr.bf16.vlgmr.msra.gmra.mrb[20].mxu1 %v687_v3 }
 0x20e   :  { %808 = vmatpush1.bf16.msra.mxu0 %v1707_v9  ;;  %849 = vmatpush1.bf16.msra.mxu1 %v1709_v10 }
 0x20f   :  { %809 = vmatprep.subr.bf16.mxu0 %v1718_v12  ;;  %850 = vmatprep.subr.bf16.mxu1 %v1720_v13 }
 0x210   :  { %839 = vmatprep.mubr.bf16.mxu0 %v2209_v5  ;;  %880 = vmatprep.mubr.bf16.mxu1 %v2209_v5 }
 0x212   :  { %810 = vmatpush1.bf16.msra.mxu0 %v1724_v14  ;;  %851 = vmatpush1.bf16.msra.mxu1 %v1726_v15 }
 0x213   :  { %811 = vmatprep.subr.bf16.mxu0 %v1737_v17  ;;  %852 = vmatprep.subr.bf16.mxu1 %v1739_v18 }
 0x216   :  { %812 = vmatpush1.bf16.msra.mxu0 %v1743_v19  ;;  %853 = vmatpush1.bf16.msra.mxu1 %v1745_v20 }
 0x217   :  { %813 = vmatprep.subr.bf16.mxu0 %v1756_v22  ;;  %854 = vmatprep.subr.bf16.mxu1 %v1758_v23 }
 0x21a   :  { %814 = vmatpush1.bf16.msra.mxu0 %v1762_v24  ;;  %855 = vmatpush1.bf16.msra.mxu1 %v1764_v25 }
 0x21b   :  { %815 = vmatprep.subr.bf16.mxu0 %v1775_v27  ;;  %856 = vmatprep.subr.bf16.mxu1 %v1777_v28 }
 0x21e   :  { %816 = vmatpush1.bf16.msra.mxu0 %v1781_v29  ;;  %857 = vmatpush1.bf16.msra.mxu1 %v1783_v30 }
 0x21f   :  { %817 = vmatprep.subr.bf16.mxu0 %v1792_v32  ;;  %858 = vmatprep.subr.bf16.mxu1 %v1798_v34 }
 0x222   :  { %818 = vmatpush1.bf16.msra.mxu0 %v1794_v33  ;;  %859 = vmatpush1.bf16.msra.mxu1 %v1800_v35 }
 0x223   :  { %819 = vmatprep.subr.bf16.mxu0 %v1804_v36  ;;  %860 = vmatprep.subr.bf16.mxu1 %v1811_v38 }
 0x226   :  { %820 = vmatpush1.bf16.msra.mxu0 %v1815_v39  ;;  %861 = vmatpush1.bf16.msra.mxu1 %v1817_v40 }
 0x227   :  { %821 = vmatprep.subr.bf16.mxu0 %v1823_v41  ;;  %862 = vmatprep.subr.bf16.mxu1 %v1830_v43 }
 0x22a   :  { %822 = vmatpush1.bf16.msra.mxu0 %v1834_v44  ;;  %863 = vmatpush1.bf16.msra.mxu1 %v1836_v45 }
 0x22b   :  { %919 = vmatprep.subr.bf16.mxu0 %v1703_v7  ;;  %960 = vmatprep.subr.bf16.mxu1 %v1705_v8 }
 0x2e0   :  { %v729_v11 = vpop.f32.mrb[20].mxu0  ;;  %v770_v42 = vpop.f32.mrb[20].mxu1 }
 0x2e1   :  { %v777_v4 = vadd.f32 %v729_v11, %v189_v16  ;;  %v779_v37 = vadd.f32 %v770_v42, %v302_v57  ;;  %v731_v47 = vpop.f32.mrb[21].mxu0  ;;  %v772_v49 = vpop.f32.mrb[21].mxu1 }
 0x2e2   :  { %v778_v51 = vadd.f32 %v731_v47, %v1917_v59  ;;  %v780_v53 = vadd.f32 %v772_v49, %v304_v2  ;;  %v733_v21 = vpop.f32.mrb[22].mxu0  ;;  %v774_v31 = vpop.f32.mrb[22].mxu1  ;;  %v2210_v49 = vld [vmem:[#allocation7_spill] sm:$0xff] }
 0x2e3   :  { %v781_v63 = vmul.f32 0.5, %v777_v4  ;;  %v734_v50 = vpop.f32.mrb[23].mxu0  ;;  %v775_v55 = vpop.f32.mrb[23].mxu1  ;;  %v783_v56 = vmul.f32 0.5, %v779_v37 }
 0x2e4   :  { %v782_v6 = vmul.f32 0.5, %v778_v51  ;;  %v308_v51 = vadd.f32 %v2210_v49, %v1868_v60 }
 0x2e5   :  { %1527 = vtanh.f32 %v781_v63 }
 0x2e6   :  { %1529 = vtanh.f32 %v782_v6 }
 0x2e7   :  { %1531 = vtanh.f32 %v780_v53  ;;  %v2211_v53 = vld [vmem:[#allocation8_spill] sm:$0xff] }
 0x2e8   :  { %1533 = vtanh.f32 %v783_v56  ;;  %v310_v21 = vadd.f32 %v2211_v53, %v1864_v54 }
 0x2ef   :  { %v1528_v58 = vpop.eup %1527 }
 0x2f0   :  { %v787_v48 = vmul.f32 0.5, %v1528_v58  ;;  %v1530_v1 = vpop.eup %1529  ;;  %v2212_v58 = vld [vmem:[#allocation9_spill] sm:$0xff] }
 0x2f1   :  { %v788_v0 = vmul.f32 0.5, %v1530_v1  ;;  %v1532_v46 = vpop.eup %1531 }
 0x2f2   :  { %v790_v62 = vadd.f32 0.5, %v787_v48  ;;  %v1534_v2 = vpop.eup %1533 }
 0x2f3   :  { %v791_v3 = vadd.f32 0.5, %v788_v0  ;;  %v789_v11 = vmul.f32 0.5, %v1534_v2 }
 0x2f4   :  { %v795_v59 = vmul.f32 %v1532_v46, %v790_v62 }
 0x2f5   :  { %v794_v16 = vmul.f32 %v791_v3, %v1963_v26  ;;  %v792_v42 = vadd.f32 0.5, %v789_v11  ;;  %v195_v26 = vadd.f32 %v1919_v61, %v1860_v52 }
 0x2f7   :  { %v2008_v57 = vadd.f32 %v795_v59, %v794_v16 }
 0x2f9   :  { %1535 = vtanh.f32 %v2008_v57 }
 0x303   :  { %v1536_v4 = vpop.eup %1535 }
 0x304   :  { %v798_v37 = vmul.f32 %v1536_v4, %v792_v42 }
 0x306   :  { %v799_v47 = vpack.c.bf16 %v798_v37, %v798_v37 }
 0x308   :  { %840 = vmatmul.mubr.bf16.vlgmr.msra.gmra.mrb[24].mxu0 %v799_v47  ;;  %881 = vmatmul.mubr.bf16.vlgmr.msra.gmra.mrb[24].mxu1 %v799_v47 }
 0x309   :  { %920 = vmatpush1.bf16.msra.mxu0 %v1707_v9  ;;  %961 = vmatpush1.bf16.msra.mxu1 %v1709_v10 }
 0x30a   :  { %921 = vmatprep.subr.bf16.mxu0 %v1718_v12  ;;  %962 = vmatprep.subr.bf16.mxu1 %v1720_v13 }
 0x30b   :  { %951 = vmatprep.mubr.bf16.mxu0 %v2209_v5  ;;  %992 = vmatprep.mubr.bf16.mxu1 %v2209_v5 }
 0x30d   :  { %922 = vmatpush1.bf16.msra.mxu0 %v1724_v14  ;;  %963 = vmatpush1.bf16.msra.mxu1 %v1726_v15 }
 0x30e   :  { %923 = vmatprep.subr.bf16.mxu0 %v1737_v17  ;;  %964 = vmatprep.subr.bf16.mxu1 %v1739_v18 }
 0x311   :  { %924 = vmatpush1.bf16.msra.mxu0 %v1743_v19  ;;  %965 = vmatpush1.bf16.msra.mxu1 %v1745_v20 }
 0x312   :  { %925 = vmatprep.subr.bf16.mxu0 %v1756_v22  ;;  %966 = vmatprep.subr.bf16.mxu1 %v1758_v23 }
 0x315   :  { %926 = vmatpush1.bf16.msra.mxu0 %v1762_v24  ;;  %967 = vmatpush1.bf16.msra.mxu1 %v1764_v25 }
 0x316   :  { %927 = vmatprep.subr.bf16.mxu0 %v1775_v27  ;;  %968 = vmatprep.subr.bf16.mxu1 %v1777_v28 }
 0x319   :  { %928 = vmatpush1.bf16.msra.mxu0 %v1781_v29  ;;  %969 = vmatpush1.bf16.msra.mxu1 %v1783_v30 }
 0x31a   :  { %929 = vmatprep.subr.bf16.mxu0 %v1792_v32  ;;  %970 = vmatprep.subr.bf16.mxu1 %v1798_v34 }
 0x31d   :  { %930 = vmatpush1.bf16.msra.mxu0 %v1794_v33  ;;  %971 = vmatpush1.bf16.msra.mxu1 %v1800_v35 }
 0x31e   :  { %931 = vmatprep.subr.bf16.mxu0 %v1804_v36  ;;  %972 = vmatprep.subr.bf16.mxu1 %v1811_v38 }
 0x321   :  { %932 = vmatpush1.bf16.msra.mxu0 %v1815_v39  ;;  %973 = vmatpush1.bf16.msra.mxu1 %v1817_v40 }
 0x322   :  { %933 = vmatprep.subr.bf16.mxu0 %v1823_v41  ;;  %974 = vmatprep.subr.bf16.mxu1 %v1830_v43 }
 0x325   :  { %934 = vmatpush1.bf16.msra.mxu0 %v1834_v44  ;;  %975 = vmatpush1.bf16.msra.mxu1 %v1836_v45 }
 0x326   :  { %1031 = vmatprep.subr.bf16.mxu0 %v1703_v7  ;;  %1072 = vmatprep.subr.bf16.mxu1 %v1705_v8 }
 0x3db   :  { %v841_v31 = vpop.f32.mrb[24].mxu0  ;;  %v882_v63 = vpop.f32.mrb[24].mxu1 }
 0x3dc   :  { %v889_v50 = vadd.f32 %v841_v31, %v195_v26  ;;  %v891_v55 = vadd.f32 %v882_v63, %v308_v51  ;;  %v843_v6 = vpop.f32.mrb[25].mxu0  ;;  %v884_v56 = vpop.f32.mrb[25].mxu1 }
 0x3dd   :  { %v890_v48 = vadd.f32 %v843_v6, %v2212_v58  ;;  %v892_v1 = vadd.f32 %v884_v56, %v310_v21  ;;  %v845_v62 = vpop.f32.mrb[26].mxu0  ;;  %v886_v0 = vpop.f32.mrb[26].mxu1  ;;  %v2214_v58 = vld [vmem:[#allocation11_spill] sm:$0xff] }
 0x3de   :  { %v893_v46 = vmul.f32 0.5, %v889_v50  ;;  %v846_v3 = vpop.f32.mrb[27].mxu0  ;;  %v887_v61 = vpop.f32.mrb[27].mxu1  ;;  %v895_v16 = vmul.f32 0.5, %v891_v55 }
 0x3df   :  { %v894_v59 = vmul.f32 0.5, %v890_v48  ;;  %v314_v48 = vadd.f32 %v2214_v58, %v1868_v60 }
 0x3e0   :  { %1537 = vtanh.f32 %v893_v46 }
 0x3e1   :  { %1539 = vtanh.f32 %v894_v59 }
 0x3e2   :  { %1541 = vtanh.f32 %v892_v1  ;;  %v2215_v1 = vld [vmem:[#allocation12_spill] sm:$0xff] }
 0x3e3   :  { %1543 = vtanh.f32 %v895_v16  ;;  %v316_v62 = vadd.f32 %v2215_v1, %v1864_v54 }
 0x3ea   :  { %v1538_v2 = vpop.eup %1537 }
 0x3eb   :  { %v899_v11 = vmul.f32 0.5, %v1538_v2  ;;  %v1540_v42 = vpop.eup %1539  ;;  %v2216_v2 = vld [vmem:[#allocation13_spill] sm:$0xff] }
 0x3ec   :  { %v900_v37 = vmul.f32 0.5, %v1540_v42  ;;  %v1542_v47 = vpop.eup %1541 }
 0x3ed   :  { %v902_v4 = vadd.f32 0.5, %v899_v11  ;;  %v1544_v21 = vpop.eup %1543 }
 0x3ee   :  { %v903_v26 = vadd.f32 0.5, %v900_v37  ;;  %v901_v31 = vmul.f32 0.5, %v1544_v21 }
 0x3ef   :  { %v907_v49 = vmul.f32 %v1542_v47, %v902_v4 }
 0x3f0   :  { %v906_v51 = vmul.f32 %v903_v26, %v2008_v57  ;;  %v904_v63 = vadd.f32 0.5, %v901_v31  ;;  %v2213_v57 = vld [vmem:[#allocation10_spill] sm:$0xff] }
 0x3f1   :  { %v201_v56 = vadd.f32 %v2213_v57, %v1860_v52 }
 0x3f2   :  { %v2053_v53 = vadd.f32 %v907_v49, %v906_v51 }
 0x3f4   :  { %1545 = vtanh.f32 %v2053_v53 }
 0x3fe   :  { %v1546_v50 = vpop.eup %1545 }
 0x3ff   :  { %v910_v55 = vmul.f32 %v1546_v50, %v904_v63 }
 0x401   :  { %v911_v6 = vpack.c.bf16 %v910_v55, %v910_v55 }
 0x403   :  { %952 = vmatmul.mubr.bf16.vlgmr.msra.gmra.mrb[28].mxu0 %v911_v6  ;;  %993 = vmatmul.mubr.bf16.vlgmr.msra.gmra.mrb[28].mxu1 %v911_v6 }
 0x404   :  { %1032 = vmatpush1.bf16.msra.mxu0 %v1707_v9  ;;  %1073 = vmatpush1.bf16.msra.mxu1 %v1709_v10 }
 0x405   :  { %1033 = vmatprep.subr.bf16.mxu0 %v1718_v12  ;;  %1074 = vmatprep.subr.bf16.mxu1 %v1720_v13 }
 0x406   :  { %1063 = vmatprep.mubr.bf16.mxu0 %v2209_v5  ;;  %1104 = vmatprep.mubr.bf16.mxu1 %v2209_v5 }
 0x408   :  { %1034 = vmatpush1.bf16.msra.mxu0 %v1724_v14  ;;  %1075 = vmatpush1.bf16.msra.mxu1 %v1726_v15 }
 0x409   :  { %1035 = vmatprep.subr.bf16.mxu0 %v1737_v17  ;;  %1076 = vmatprep.subr.bf16.mxu1 %v1739_v18 }
 0x40c   :  { %1036 = vmatpush1.bf16.msra.mxu0 %v1743_v19  ;;  %1077 = vmatpush1.bf16.msra.mxu1 %v1745_v20 }
 0x40d   :  { %1037 = vmatprep.subr.bf16.mxu0 %v1756_v22  ;;  %1078 = vmatprep.subr.bf16.mxu1 %v1758_v23 }
 0x410   :  { %1038 = vmatpush1.bf16.msra.mxu0 %v1762_v24  ;;  %1079 = vmatpush1.bf16.msra.mxu1 %v1764_v25 }
 0x411   :  { %1039 = vmatprep.subr.bf16.mxu0 %v1775_v27  ;;  %1080 = vmatprep.subr.bf16.mxu1 %v1777_v28 }
 0x414   :  { %1040 = vmatpush1.bf16.msra.mxu0 %v1781_v29  ;;  %1081 = vmatpush1.bf16.msra.mxu1 %v1783_v30 }
 0x415   :  { %1041 = vmatprep.subr.bf16.mxu0 %v1792_v32  ;;  %1082 = vmatprep.subr.bf16.mxu1 %v1798_v34 }
 0x418   :  { %1042 = vmatpush1.bf16.msra.mxu0 %v1794_v33  ;;  %1083 = vmatpush1.bf16.msra.mxu1 %v1800_v35 }
 0x419   :  { %1043 = vmatprep.subr.bf16.mxu0 %v1804_v36  ;;  %1084 = vmatprep.subr.bf16.mxu1 %v1811_v38 }
 0x41c   :  { %1044 = vmatpush1.bf16.msra.mxu0 %v1815_v39  ;;  %1085 = vmatpush1.bf16.msra.mxu1 %v1817_v40 }
 0x41d   :  { %1045 = vmatprep.subr.bf16.mxu0 %v1823_v41  ;;  %1086 = vmatprep.subr.bf16.mxu1 %v1830_v43 }
 0x420   :  { %1046 = vmatpush1.bf16.msra.mxu0 %v1834_v44  ;;  %1087 = vmatpush1.bf16.msra.mxu1 %v1836_v45 }
 0x421   :  { %1143 = vmatprep.subr.bf16.mxu0 %v1703_v7  ;;  %1184 = vmatprep.subr.bf16.mxu1 %v1705_v8 }
 0x4d6   :  { %v953_v0 = vpop.f32.mrb[28].mxu0  ;;  %v994_v46 = vpop.f32.mrb[28].mxu1 }
 0x4d7   :  { %v1001_v3 = vadd.f32 %v953_v0, %v201_v56  ;;  %v1003_v61 = vadd.f32 %v994_v46, %v314_v48  ;;  %v955_v59 = vpop.f32.mrb[29].mxu0  ;;  %v996_v16 = vpop.f32.mrb[29].mxu1 }
 0x4d8   :  { %v1002_v11 = vadd.f32 %v955_v59, %v2216_v2  ;;  %v1004_v42 = vadd.f32 %v996_v16, %v316_v62  ;;  %v957_v4 = vpop.f32.mrb[30].mxu0  ;;  %v998_v37 = vpop.f32.mrb[30].mxu1 }
 0x4d9   :  { %v1005_v47 = vmul.f32 0.5, %v1001_v3  ;;  %v958_v26 = vpop.f32.mrb[31].mxu0  ;;  %v999_v49 = vpop.f32.mrb[31].mxu1  ;;  %v1007_v21 = vmul.f32 0.5, %v1003_v61 }
 0x4da   :  { %v1006_v51 = vmul.f32 0.5, %v1002_v11 }
 0x4db   :  { %1547 = vtanh.f32 %v1005_v47 }
 0x4dc   :  { %1549 = vtanh.f32 %v1006_v51 }
 0x4dd   :  { %1551 = vtanh.f32 %v1004_v42 }
 0x4de   :  { %1553 = vtanh.f32 %v1007_v21 }
 0x4e5   :  { %v1548_v31 = vpop.eup %1547 }
 0x4e6   :  { %v1011_v63 = vmul.f32 0.5, %v1548_v31  ;;  %v1550_v50 = vpop.eup %1549 }
 0x4e7   :  { %v1012_v6 = vmul.f32 0.5, %v1550_v50  ;;  %v1552_v57 = vpop.eup %1551 }
 0x4e8   :  { %v1014_v55 = vadd.f32 0.5, %v1011_v63  ;;  %v1554_v62 = vpop.eup %1553 }
 0x4e9   :  { %v1015_v56 = vadd.f32 0.5, %v1012_v6  ;;  %v1013_v0 = vmul.f32 0.5, %v1554_v62  ;;  %v1594_v62 = vld [vmem:[#allocation4 + $0x2c] ss:$16 sps:$4 sm:$0xff]  }
 0x4ea   :  { %v1019_v58 = vmul.f32 %v1552_v57, %v1014_v55 }
 0x4eb   :  { %v1018_v48 = vmul.f32 %v1015_v56, %v2053_v53  ;;  %v1016_v46 = vadd.f32 0.5, %v1013_v0  ;;  %v1591_v56 = vld [vmem:[#allocation4] ss:$16 sps:$4 sm:$0xff]   ;;  %v1596_v0 = vld [vmem:[#allocation4 + $0x28] ss:$16 sps:$4 sm:$0xff]  }
 0x4ed   :  { %v2098_v1 = vadd.f32 %v1019_v58, %v1018_v48  ;;  %v1592_v58 = vld [vmem:[#allocation4 + $0x8] ss:$16 sps:$4 sm:$0xff]   ;;  %v1593_v48 = vld [vmem:[#allocation4 + $0x24] ss:$16 sps:$4 sm:$0xff]  }
 0x4ef   :  { %1555 = vtanh.f32 %v2098_v1 }
 0x4f9   :  { %v1556_v3 = vpop.eup %1555 }
 0x4fa   :  { %v1022_v61 = vmul.f32 %v1556_v3, %v1016_v46  ;;  %v1597_v46 = vld [vmem:[#allocation4 + $0x44] ss:$16 sps:$4 sm:$0xff]   ;;  %v1598_v3 = vld [vmem:[#allocation4 + $0x4c] ss:$16 sps:$4 sm:$0xff]  }
 0x4fc   :  { %v1023_v59 = vpack.c.bf16 %v1022_v61, %v1022_v61  ;;  %v1599_v61 = vld [vmem:[#allocation4 + $0x40] ss:$16 sps:$4 sm:$0xff]  }
 0x4fe   :  { %1064 = vmatmul.mubr.bf16.vlgmr.msra.gmra.mrb[32].mxu0 %v1023_v59  ;;  %1105 = vmatmul.mubr.bf16.vlgmr.msra.gmra.mrb[32].mxu1 %v1023_v59  ;;  %v1600_v59 = vld [vmem:[#allocation4 + $0x48] ss:$16 sps:$4 sm:$0xff]  }
 0x4ff   :  { %1144 = vmatpush1.bf16.msra.mxu0 %v1707_v9  ;;  %1185 = vmatpush1.bf16.msra.mxu1 %v1709_v10  ;;  %v2217_v9 = vld [vmem:[#allocation14_spill] sm:$0xff] }
 0x500   :  { %1145 = vmatprep.subr.bf16.mxu0 %v1718_v12  ;;  %1186 = vmatprep.subr.bf16.mxu1 %v1720_v13  ;;  %v207_v10 = vadd.f32 %v2217_v9, %v1860_v52  ;;  %v2218_v12 = vld [vmem:[#allocation15_spill] sm:$0xff] }
 0x501   :  { %1175 = vmatprep.mubr.bf16.mxu0 %v2209_v5  ;;  %1216 = vmatprep.mubr.bf16.mxu1 %v2209_v5  ;;  %v320_v13 = vadd.f32 %v2218_v12, %v1868_v60  ;;  %v1601_v9 = vld [vmem:[#allocation4 + $0x64] ss:$16 sps:$4 sm:$0xff]   ;;  %v1603_v12 = vld [vmem:[#allocation4 + $0x60] ss:$16 sps:$4 sm:$0xff]  }
 0x503   :  { %1146 = vmatpush1.bf16.msra.mxu0 %v1724_v14  ;;  %1187 = vmatpush1.bf16.msra.mxu1 %v1726_v15  ;;  %v2219_v14 = vld [vmem:[#allocation17_spill] sm:$0xff] }
 0x504   :  { %1147 = vmatprep.subr.bf16.mxu0 %v1737_v17  ;;  %1188 = vmatprep.subr.bf16.mxu1 %v1739_v18  ;;  %v322_v15 = vadd.f32 %v2219_v14, %v1864_v54  ;;  %v1606_v14 = vld [vmem:[#allocation4 + $0x8c] ss:$16 sps:$4 sm:$0xff]  }
 0x507   :  { %1148 = vmatpush1.bf16.msra.mxu0 %v1743_v19  ;;  %1189 = vmatpush1.bf16.msra.mxu1 %v1745_v20 }
 0x508   :  { %1149 = vmatprep.subr.bf16.mxu0 %v1756_v22  ;;  %1190 = vmatprep.subr.bf16.mxu1 %v1758_v23 }
 0x50b   :  { %1150 = vmatpush1.bf16.msra.mxu0 %v1762_v24  ;;  %1191 = vmatpush1.bf16.msra.mxu1 %v1764_v25  ;;  %v2220_v24 = vld [vmem:[#allocation16_spill] sm:$0xff] }
 0x50c   :  { %1151 = vmatprep.subr.bf16.mxu0 %v1775_v27  ;;  %1192 = vmatprep.subr.bf16.mxu1 %v1777_v28 }
 0x50f   :  { %1152 = vmatpush1.bf16.msra.mxu0 %v1781_v29  ;;  %1193 = vmatpush1.bf16.msra.mxu1 %v1783_v30 }
 0x510   :  { %1153 = vmatprep.subr.bf16.mxu0 %v1792_v32  ;;  %1194 = vmatprep.subr.bf16.mxu1 %v1798_v34 }
 0x513   :  { %1154 = vmatpush1.bf16.msra.mxu0 %v1794_v33  ;;  %1195 = vmatpush1.bf16.msra.mxu1 %v1800_v35 }
 0x514   :  { %1155 = vmatprep.subr.bf16.mxu0 %v1804_v36  ;;  %1196 = vmatprep.subr.bf16.mxu1 %v1811_v38 }
 0x517   :  { %1156 = vmatpush1.bf16.msra.mxu0 %v1815_v39  ;;  %1197 = vmatpush1.bf16.msra.mxu1 %v1817_v40 }
 0x518   :  { %1157 = vmatprep.subr.bf16.mxu0 %v1823_v41  ;;  %1198 = vmatprep.subr.bf16.mxu1 %v1830_v43 }
 0x51b   :  { %1158 = vmatpush1.bf16.msra.mxu0 %v1834_v44  ;;  %1199 = vmatpush1.bf16.msra.mxu1 %v1836_v45 }
 0x51c   :  { %1255 = vmatprep.subr.bf16.mxu0 %v1703_v7  ;;  %1296 = vmatprep.subr.bf16.mxu1 %v1705_v8 }
 0x5d1   :  { %v1065_v17 = vpop.f32.mrb[32].mxu0  ;;  %v1106_v18 = vpop.f32.mrb[32].mxu1 }
 0x5d2   :  { %v1113_v19 = vadd.f32 %v1065_v17, %v207_v10  ;;  %v1115_v20 = vadd.f32 %v1106_v18, %v320_v13  ;;  %v1067_v22 = vpop.f32.mrb[33].mxu0  ;;  %v1108_v23 = vpop.f32.mrb[33].mxu1  ;;  %v1602_v10 = vld [vmem:[#allocation4 + $0x6c] ss:$16 sps:$4 sm:$0xff]   ;;  %v1604_v13 = vld [vmem:[#allocation4 + $0x68] ss:$16 sps:$4 sm:$0xff]  }
 0x5d3   :  { %v1114_v25 = vadd.f32 %v1067_v22, %v2220_v24  ;;  %v1116_v7 = vadd.f32 %v1108_v23, %v322_v15  ;;  %v1069_v27 = vpop.f32.mrb[34].mxu0  ;;  %v1110_v8 = vpop.f32.mrb[34].mxu1  ;;  %v1607_v15 = vld [vmem:[#allocation4 + $0x80] ss:$16 sps:$4 sm:$0xff]   ;;  %v1608_v17 = vld [vmem:[#allocation4 + $0x88] ss:$16 sps:$4 sm:$0xff]  }
 0x5d4   :  { %v1117_v28 = vmul.f32 0.5, %v1113_v19  ;;  %v1070_v29 = vpop.f32.mrb[35].mxu0  ;;  %v1111_v30 = vpop.f32.mrb[35].mxu1  ;;  %v1119_v16 = vmul.f32 0.5, %v1115_v20 }
 0x5d5   :  { %v1118_v53 = vmul.f32 0.5, %v1114_v25 }
 0x5d6   :  { %1557 = vtanh.f32 %v1117_v28 }
 0x5d7   :  { %1559 = vtanh.f32 %v1118_v53 }
 0x5d8   :  { %1561 = vtanh.f32 %v1116_v7 }
 0x5d9   :  { %1563 = vtanh.f32 %v1119_v16 }
 0x5e0   :  { %v1558_v2 = vpop.eup %1557 }
 0x5e1   :  { %v1123_v11 = vmul.f32 0.5, %v1558_v2  ;;  %v1560_v42 = vpop.eup %1559 }
 0x5e2   :  { %v1124_v37 = vmul.f32 0.5, %v1560_v42  ;;  %v1562_v47 = vpop.eup %1561 }
 0x5e3   :  { %v1126_v4 = vadd.f32 0.5, %v1123_v11  ;;  %v1564_v31 = vpop.eup %1563 }
 0x5e4   :  { %v1127_v26 = vadd.f32 0.5, %v1124_v37  ;;  %v1125_v63 = vmul.f32 0.5, %v1564_v31 }
 0x5e5   :  { %v1131_v49 = vmul.f32 %v1562_v47, %v1126_v4 }
 0x5e6   :  { %v1130_v51 = vmul.f32 %v1127_v26, %v2098_v1  ;;  %v1128_v50 = vadd.f32 0.5, %v1125_v63  ;;  %v1595_v1 = vld [vmem:[#allocation4 + $0x20] ss:$16 sps:$4 sm:$0xff]  }
 0x5e8   :  { %v2143_v21 = vadd.f32 %v1131_v49, %v1130_v51 }
 0x5ea   :  { %1565 = vtanh.f32 %v2143_v21 }
 0x5f4   :  { %v1566_v55 = vpop.eup %1565 }
 0x5f5   :  { %v1134_v6 = vmul.f32 %v1566_v55, %v1128_v50  ;;  %v2225_v50 = vld [vmem:[#allocation22_spill] sm:$0xff] }
 0x5f6   :  { %v219_v55 = vadd.f32 %v2225_v50, %v1860_v52 }
 0x5f7   :  { %v1135_v57 = vpack.c.bf16 %v1134_v6, %v1134_v6  ;;  %v2226_v6 = vld [vmem:[#allocation23_spill] sm:$0xff] }
 0x5f9   :  { %1176 = vmatmul.mubr.bf16.vlgmr.msra.gmra.mrb[36].mxu0 %v1135_v57  ;;  %1217 = vmatmul.mubr.bf16.vlgmr.msra.gmra.mrb[36].mxu1 %v1135_v57  ;;  %v332_v57 = vadd.f32 %v2226_v6, %v1868_v60 }
 0x5fa   :  { %1256 = vmatpush1.bf16.msra.mxu0 %v1591_v56  ;;  %1297 = vmatpush1.bf16.msra.mxu1 %v1592_v58  ;;  %v2227_v56 = vld [vmem:[#allocation25_spill] sm:$0xff] }
 0x5fb   :  { %1257 = vmatprep.subr.bf16.mxu0 %v1593_v48  ;;  %1298 = vmatprep.subr.bf16.mxu1 %v1594_v62  ;;  %v334_v58 = vadd.f32 %v2227_v56, %v1864_v54 }
 0x5fc   :  { %1287 = vmatprep.mubr.bf16.mxu0 %v2209_v5  ;;  %1328 = vmatprep.mubr.bf16.mxu1 %v2209_v5  ;;  %v1605_v5 = vld [vmem:[#allocation4 + $0x84] ss:$16 sps:$4 sm:$0xff]  }
 0x5fe   :  { %1258 = vmatpush1.bf16.msra.mxu0 %v1595_v1  ;;  %1299 = vmatpush1.bf16.msra.mxu1 %v1596_v0 }
 0x5ff   :  { %1259 = vmatprep.subr.bf16.mxu0 %v1597_v46  ;;  %1300 = vmatprep.subr.bf16.mxu1 %v1598_v3  ;;  %v2228_v3 = vld [vmem:[#allocation24_spill] sm:$0xff] }
 0x602   :  { %1260 = vmatpush1.bf16.msra.mxu0 %v1599_v61  ;;  %1301 = vmatpush1.bf16.msra.mxu1 %v1600_v59 }
 0x603   :  { %1261 = vmatprep.subr.bf16.mxu0 %v1601_v9  ;;  %1302 = vmatprep.subr.bf16.mxu1 %v1602_v10 }
 0x606   :  { %1262 = vmatpush1.bf16.msra.mxu0 %v1603_v12  ;;  %1303 = vmatpush1.bf16.msra.mxu1 %v1604_v13 }
 0x607   :  { %1263 = vmatprep.subr.bf16.mxu0 %v1605_v5  ;;  %1304 = vmatprep.subr.bf16.mxu1 %v1606_v14 }
 0x60a   :  { %1264 = vmatpush1.bf16.msra.mxu0 %v1607_v15  ;;  %1305 = vmatpush1.bf16.msra.mxu1 %v1608_v17 }
 0x60b   :  { %1265 = vmatprep.subr.bf16.mxu0 %v1792_v32  ;;  %1306 = vmatprep.subr.bf16.mxu1 %v1798_v34  ;;  %v2221_v32 = vld [vmem:[#allocation18_spill] sm:$0xff]  ;;  %v2222_v34 = vld [vmem:[#allocation19_spill] sm:$0xff] }
 0x60e   :  { %1266 = vmatpush1.bf16.msra.mxu0 %v1794_v33  ;;  %1307 = vmatpush1.bf16.msra.mxu1 %v1800_v35  ;;  %v213_v33 = vadd.f32 %v2221_v32, %v1860_v52  ;;  %v326_v35 = vadd.f32 %v2222_v34, %v1868_v60 }
 0x60f   :  { %1267 = vmatprep.subr.bf16.mxu0 %v1804_v36  ;;  %1308 = vmatprep.subr.bf16.mxu1 %v1811_v38  ;;  %v2223_v36 = vld [vmem:[#allocation21_spill] sm:$0xff] }
 0x610   :  { %v328_v38 = vadd.f32 %v2223_v36, %v1864_v54 }
 0x612   :  { %1268 = vmatpush1.bf16.msra.mxu0 %v1815_v39  ;;  %1309 = vmatpush1.bf16.msra.mxu1 %v1817_v40 }
 0x613   :  { %1269 = vmatprep.subr.bf16.mxu0 %v1823_v41  ;;  %1310 = vmatprep.subr.bf16.mxu1 %v1830_v43  ;;  %v2224_v43 = vld [vmem:[#allocation20_spill] sm:$0xff] }
 0x616   :  { %1270 = vmatpush1.bf16.msra.mxu0 %v1834_v44  ;;  %1311 = vmatpush1.bf16.msra.mxu1 %v1836_v45 }
 0x6cc   :  { %v1177_v39 = vpop.f32.mrb[36].mxu0  ;;  %v1218_v18 = vpop.f32.mrb[36].mxu1 }
 0x6cd   :  { %v1225_v40 = vadd.f32 %v1177_v39, %v213_v33  ;;  %v1227_v19 = vadd.f32 %v1218_v18, %v326_v35  ;;  %v1179_v41 = vpop.f32.mrb[37].mxu0  ;;  %v1220_v20 = vpop.f32.mrb[37].mxu1 }
 0x6ce   :  { %v1226_v22 = vadd.f32 %v1179_v41, %v2224_v43  ;;  %v1228_v44 = vadd.f32 %v1220_v20, %v328_v38  ;;  %v1181_v23 = vpop.f32.mrb[38].mxu0  ;;  %v1222_v45 = vpop.f32.mrb[38].mxu1  ;;  %v1451_v43 = vld [vmem:[%s2185_s4] ss:$0 sm:$0xff] }
 0x6cf   :  { %v1229_v24 = vmul.f32 0.5, %v1225_v40  ;;  %v1182_v25 = vpop.f32.mrb[39].mxu0  ;;  %v1223_v7 = vpop.f32.mrb[39].mxu1  ;;  %v1231_v8 = vmul.f32 0.5, %v1227_v19  ;;  %v1452_v23 = vld [vmem:[#allocation3] ss:$0 sm:$0xff] }
 0x6d0   :  { %v1230_v27 = vmul.f32 0.5, %v1226_v22 }
 0x6d1   :  { %1567 = vtanh.f32 %v1229_v24 }
 0x6d2   :  { %1569 = vtanh.f32 %v1230_v27 }
 0x6d3   :  { %1571 = vtanh.f32 %v1228_v44 }
 0x6d4   :  { %1573 = vtanh.f32 %v1231_v8 }
 0x6db   :  { %v1568_v28 = vpop.eup %1567 }
 0x6dc   :  { %v1235_v29 = vmul.f32 0.5, %v1568_v28  ;;  %v1570_v30 = vpop.eup %1569 }
 0x6dd   :  { %v1236_v16 = vmul.f32 0.5, %v1570_v30  ;;  %v1572_v2 = vpop.eup %1571 }
 0x6de   :  { %v1238_v53 = vadd.f32 0.5, %v1235_v29  ;;  %v1574_v47 = vpop.eup %1573 }
 0x6df   :  { %v1239_v11 = vadd.f32 0.5, %v1236_v16  ;;  %v1237_v26 = vmul.f32 0.5, %v1574_v47 }
 0x6e0   :  { %v1243_v42 = vmul.f32 %v1572_v2, %v1238_v53 }
 0x6e1   :  { %v1242_v4 = vmul.f32 %v1239_v11, %v2143_v21  ;;  %v1240_v49 = vadd.f32 0.5, %v1237_v26 }
 0x6e3   :  { %v1244_v37 = vadd.f32 %v1243_v42, %v1242_v4 }
 0x6e5   :  { %1575 = vtanh.f32 %v1244_v37 }
 0x6ef   :  { %v1576_v51 = vpop.eup %1575 }
 0x6f0   :  { %v1246_v31 = vmul.f32 %v1576_v51, %v1240_v49 }
 0x6f2   :  { %v1247_v63 = vpack.c.bf16 %v1246_v31, %v1246_v31 }
 0x6f4   :  { %1288 = vmatmul.mubr.bf16.vlgmr.msra.gmra.mrb[40].mxu0 %v1247_v63  ;;  %1329 = vmatmul.mubr.bf16.vlgmr.msra.gmra.mrb[40].mxu1 %v1247_v63 }
 0x7c7   :  { %v1289_v21 = vpop.f32.mrb[40].mxu0  ;;  %v1330_v48 = vpop.f32.mrb[40].mxu1 }
 0x7c8   :  { %v1337_v62 = vadd.f32 %v1289_v21, %v219_v55  ;;  %v1339_v1 = vadd.f32 %v1330_v48, %v332_v57  ;;  %v1291_v0 = vpop.f32.mrb[41].mxu0  ;;  %v1332_v46 = vpop.f32.mrb[41].mxu1 }
 0x7c9   :  { %v1338_v61 = vadd.f32 %v1291_v0, %v2228_v3  ;;  %v1340_v59 = vadd.f32 %v1332_v46, %v334_v58  ;;  %v1293_v9 = vpop.f32.mrb[42].mxu0  ;;  %v1334_v10 = vpop.f32.mrb[42].mxu1 }
 0x7ca   :  { %v1341_v12 = vmul.f32 0.5, %v1337_v62  ;;  %v1294_v13 = vpop.f32.mrb[43].mxu0  ;;  %v1335_v52 = vpop.f32.mrb[43].mxu1  ;;  %v1343_v60 = vmul.f32 0.5, %v1339_v1 }
 0x7cb   :  { %v1342_v5 = vmul.f32 0.5, %v1338_v61 }
 0x7cc   :  { %1577 = vtanh.f32 %v1341_v12 }
 0x7cd   :  { %1579 = vtanh.f32 %v1342_v5 }
 0x7ce   :  { %1581 = vtanh.f32 %v1340_v59 }
 0x7cf   :  { %1583 = vtanh.f32 %v1343_v60 }
 0x7d6   :  { %v1578_v54 = vpop.eup %1577 }
 0x7d7   :  { %v1347_v14 = vmul.f32 0.5, %v1578_v54  ;;  %v1580_v15 = vpop.eup %1579 }
 0x7d8   :  { %v1348_v32 = vmul.f32 0.5, %v1580_v15  ;;  %v1582_v33 = vpop.eup %1581 }
 0x7d9   :  { %v1350_v17 = vadd.f32 0.5, %v1347_v14  ;;  %v1584_v39 = vpop.eup %1583 }
 0x7da   :  { %v1351_v34 = vadd.f32 0.5, %v1348_v32  ;;  %v1349_v18 = vmul.f32 0.5, %v1584_v39 }
 0x7db   :  { %v1355_v35 = vmul.f32 %v1582_v33, %v1350_v17 }
 0x7dc   :  { %v1354_v36 = vmul.f32 %v1351_v34, %v1244_v37  ;;  %v1352_v40 = vadd.f32 0.5, %v1349_v18 }
 0x7de   :  { %v1356_v38 = vadd.f32 %v1355_v35, %v1354_v36 }
 0x7e0   :  { %1585 = vtanh.f32 %v1356_v38 }
 0x7ea   :  { %v1586_v19 = vpop.eup %1585 }
 0x7eb   :  { %v1358_v41 = vmul.f32 %v1586_v19, %v1352_v40 }
 0x7ed   :  { %v1359_v20 = vpack.c.bf16 %v1358_v41, %v1358_v41 }
 0x7ef   :  { %v1360_v22 = vunpack.c.l.bf16 %v1359_v20 }
 0x7f1   :  { %v1368_v44 = vmul.f32 %v1451_v43, %v1360_v22 }
 0x7f3   :  { %1369 = vadd.xlane.f32.xlu0 %v1368_v44 }
 0x880   :  { %v1370_v45 = vpop.xlane.xlu0 %1369 }
 0x881   :  { %v1378_v24 = vadd.f32 %v1452_v23, %v1370_v45 }
 0x883   :  { %v1453_v25 = vmul.f32 -1.442695, %v1378_v24 }
 0x885   :  { %1587 = vpow2.f32 %v1453_v25 }
 0x88f   :  { %v1588_v7 = vpop.eup %1587 }
 0x890   :  { %v1382_v27 = vadd.f32 1.0, %v1588_v7 }
 0x892   :  { %1589 = vrcp.f32 %v1382_v27 }
 0x89c   :  { %v1590_v8 = vpop.eup %1589 }
 0x89d   :  { %1386 = vst.msk [vmem:[%s2187_s6] sm:$0xff] %vm1385_vm2, %v1590_v8 }
 0x89e   :  { %1391 = vsyncpa [#allocation5], 1 }

</bundles_post_ra>
